<compile_context>
chip_gen: v6e
topology: v6e:2x2x1
jax: 0.10.0
libtpu: 0.0.40
codegen_flags: <defaults>
</compile_context>

<pallas_src>
import math
import functools
import numpy as np
import jax
import jax.numpy as jnp
from jax.experimental import pallas as pl
from jax.experimental.pallas import tpu as pltpu

# ---- small synthetic config (config.latent_ndim, nheads, nlayers, dropout=0) ----
B, S = 2, 8        # batch, seq_len
D = 32             # latent_ndim
H = 4              # nheads
L = 2              # nlayers
F = 4 * D          # feed-forward hidden dim (assumed 4x)
LN_EPS = 1e-5
SLAB_LANES = 128   # lane width of the packed parameter slab (>= max(3D, F))


def _build_layout():
    """Row layout of the packed parameter slab (shared by packer and kernel)."""
    layout = {}
    off = 0

    def add(name, rows, cols):
        nonlocal off
        off = ((off + 7) // 8) * 8          # 8-sublane-align every entry
        layout[name] = (off, rows, cols)
        off += rows

    add("x_start", 1, D)
    add("w_emb", 1, D)
    add("b_emb", 1, D)
    add("w_out", 1, D)
    add("b_out", 1, 1)
    add("cos", S, D)
    add("sin", S, D)                        # sign-folded sin table
    for l in range(L):
        add(f"sa_wqkv{l}", D, 3 * D)
        add(f"sa_bqkv{l}", 1, 3 * D)
        add(f"sa_wo{l}", D, D)
        add(f"sa_bo{l}", 1, D)
        add(f"ca_wv{l}", D, D)
        add(f"ca_bv{l}", 1, D)
        add(f"ca_wo{l}", D, D)
        add(f"ca_bo{l}", 1, D)
        add(f"ln_w{l}", 3, D)
        add(f"ln_b{l}", 3, D)
        add(f"ff_w1{l}", D, F)
        add(f"ff_b1{l}", 1, F)
        add(f"ff_w2{l}", F, D)
        add(f"ff_b2{l}", 1, D)
    rows = ((off + 7) // 8) * 8
    return layout, rows


LAYOUT, SLAB_ROWS = _build_layout()


def _layer_norm(v, g, b):
    mu = jnp.mean(v, axis=-1, keepdims=True)
    var = jnp.mean((v - mu) ** 2, axis=-1, keepdims=True)
    return (v - mu) * jax.lax.rsqrt(var + LN_EPS) * g + b


def decoder_kernel(x_ref, zq_ref, slab_ref, out_ref, *, nheads, nlayers, seq, dmodel):
    def prm(name):
        r0, r, c = LAYOUT[name]
        return slab_ref[r0:r0 + r, :c]

    dh = dmodel // nheads
    scale = 1.0 / math.sqrt(dh)

    # --- input embedding: MLP(1, D) as a VPU outer product + SiLU
    # TODO(synk): exact MLP definition not provided; Linear(1, D) + SiLU assumed.
    x_col = x_ref[0]                                           # (S, 1)
    h = x_col * prm("w_emb") + prm("b_emb")                    # (S, D) outer product
    h = h * jax.nn.sigmoid(h)                                  # SiLU

    # --- teacher-forcing shift: row s <- h[s-1], row 0 <- learned x_start
    #     (sublane roll + row-0 select; no concatenate)
    h_shift = pltpu.roll(h, 1, axis=0)
    row_ix = jax.lax.broadcasted_iota(jnp.int32, (seq, dmodel), 0)
    x_start_b = jnp.broadcast_to(prm("x_start"), (seq, dmodel))
    tokens = jnp.where(row_ix == 0, x_start_b, h_shift)

    # --- rotary PE (interleaved-pair convention of rotary-embedding-torch):
    #     out = x*cos + swap_pairs(x)*sin_signed, sign folded into the sin table,
    #     pair swap done with two XLU lane rolls + even/odd select (no MXU permute).
    lane_ix = jax.lax.broadcasted_iota(jnp.int32, (seq, dmodel), 1)
    even = jnp.bitwise_and(lane_ix, 1) == 0
    swapped = jnp.where(even,
                        pltpu.roll(tokens, dmodel - 1, axis=1),   # lane d -> x[d+1]
                        pltpu.roll(tokens, 1, axis=1))            # lane d -> x[d-1]
    x = tokens * prm("cos") + swapped * prm("sin")

    zq_row = zq_ref[0]                                          # (1, D)

    # --- transformer decoder blocks
    # TODO(synk): TransformerDecoderBlock internals not provided; post-norm block
    #             (self-attn -> cross-attn -> ReLU FFN), dropout=0, mask=None assumed.
    for l in range(nlayers):
        ln_w, ln_b = prm(f"ln_w{l}"), prm(f"ln_b{l}")

        # ---- self-attention: fused QKV projection, per-head (8x8) dots,
        #      head-concat folded into row-blocks of Wo (no lane concatenate).
        qkv = jnp.dot(x, prm(f"sa_wqkv{l}"),
                      preferred_element_type=jnp.float32) + prm(f"sa_bqkv{l}")
        wo = prm(f"sa_wo{l}")
        sa = prm(f"sa_bo{l}")                                   # (1, D) bias, broadcasts
        for hh in range(nheads):
            qh = qkv[:, hh * dh:(hh + 1) * dh]
            kh = qkv[:, dmodel + hh * dh:dmodel + (hh + 1) * dh]
            vh = qkv[:, 2 * dmodel + hh * dh:2 * dmodel + (hh + 1) * dh]
            s = jax.lax.dot_general(qh, kh, (((1,), (1,)), ((), ())),
                                    preferred_element_type=jnp.float32) * scale
            s = s - jnp.max(s, axis=-1, keepdims=True)
            pr = jnp.exp(s)
            pr = pr / jnp.sum(pr, axis=-1, keepdims=True)
            ctx = jnp.dot(pr, vh, preferred_element_type=jnp.float32)   # (S, dh)
            sa = sa + jnp.dot(ctx, wo[hh * dh:(hh + 1) * dh, :],
                              preferred_element_type=jnp.float32)
        x = _layer_norm(x + sa, ln_w[0:1, :], ln_b[0:1, :])

        # ---- cross-attention, collapsed algebraically: zq is one row repeated over
        #      the sequence -> softmax over identical keys is uniform -> attention
        #      output == zq @ Wv + bv for every query (exact; Wq/Wk unused).
        v_row = jnp.dot(zq_row, prm(f"ca_wv{l}"),
                        preferred_element_type=jnp.float32) + prm(f"ca_bv{l}")
        o_row = jnp.dot(v_row, prm(f"ca_wo{l}"),
                        preferred_element_type=jnp.float32) + prm(f"ca_bo{l}")
        x = _layer_norm(x + jnp.broadcast_to(o_row, (seq, dmodel)),
                        ln_w[1:2, :], ln_b[1:2, :])

        # ---- feed-forward
        m = jnp.dot(x, prm(f"ff_w1{l}"),
                    preferred_element_type=jnp.float32) + prm(f"ff_b1{l}")
        m = jnp.maximum(m, 0.0)                                 # ReLU FFN (assumed)
        ff = jnp.dot(m, prm(f"ff_w2{l}"),
                     preferred_element_type=jnp.float32) + prm(f"ff_b2{l}")
        x = _layer_norm(x + ff, ln_w[2:3, :], ln_b[2:3, :])

    # --- output head: Sequential(MLP(D, 1), Tanh()), computed lane-dense as (1, S)
    # TODO(synk): MLP(D, 1) assumed Linear + SiLU before the Tanh.
    y = jax.lax.dot_general(prm("w_out"), x, (((1,), (1,)), ((), ())),
                            preferred_element_type=jnp.float32) + prm("b_out")
    y = y * jax.nn.sigmoid(y)
    out_ref[0] = jnp.tanh(y)                                    # (1, S) lane-dense store


def rotary_tables(seq, d):
    # default rotary-embedding-torch frequencies (theta=10000, learned_freq init),
    # interleaved repeat; sign of rotate_half folded into the sin table.
    inv = 1.0 / (10000.0 ** (np.arange(0, d, 2, dtype=np.float64) / d))
    fr = np.arange(seq, dtype=np.float64)[:, None] * inv[None, :]       # (S, d/2)
    fr = np.repeat(fr, 2, axis=1)                                       # (S, d)
    cos = np.cos(fr).astype(np.float32)
    sign = np.tile(np.array([-1.0, 1.0], np.float32), d // 2)           # -,+,-,+,...
    sin_signed = np.sin(fr).astype(np.float32) * sign[None, :]
    return cos, sin_signed


def make_params(key):
    ks = jax.random.split(key, 10)

    def nrm(k, shape, scale=0.05):
        return jax.random.normal(k, shape, jnp.float32) * scale

    # cross-attn Wq/Wk exist in the torch module but are mathematically unused once
    # the broadcast-zq softmax collapses to uniform, so they are not materialized.
    return dict(
        x_start=nrm(ks[0], (1, D), 1.0),                  # nn.Parameter randn
        w_emb=nrm(ks[1], (1, D)), b_emb=jnp.zeros((1, D), jnp.float32),
        sa_wqkv=nrm(ks[2], (L, D, 3 * D)),                # fused [Wq|Wk|Wv] per layer
        sa_bqkv=jnp.zeros((L, 1, 3 * D), jnp.float32),
        sa_wo=nrm(ks[3], (L, D, D)), sa_bo=jnp.zeros((L, 1, D), jnp.float32),
        ca_wv=nrm(ks[4], (L, D, D)), ca_bv=jnp.zeros((L, 1, D), jnp.float32),
        ca_wo=nrm(ks[5], (L, D, D)), ca_bo=jnp.zeros((L, 1, D), jnp.float32),
        ln_w=jnp.ones((L, 3, D), jnp.float32), ln_b=jnp.zeros((L, 3, D), jnp.float32),
        ff_w1=nrm(ks[6], (L, D, F)), ff_b1=jnp.zeros((L, 1, F), jnp.float32),
        ff_w2=nrm(ks[7], (L, F, D)), ff_b2=jnp.zeros((L, 1, D), jnp.float32),
        w_out=nrm(ks[8], (1, D)), b_out=jnp.zeros((1, 1), jnp.float32),
    )


def build_slab(params, cos, sin_signed):
    """Pack every parameter / table into one (SLAB_ROWS, 128) f32 slab -> one DMA."""
    slab = np.zeros((SLAB_ROWS, SLAB_LANES), np.float32)

    def put(name, arr):
        r0, r, c = LAYOUT[name]
        slab[r0:r0 + r, :c] = np.asarray(arr, np.float32).reshape(r, c)

    put("x_start", params["x_start"])
    put("w_emb", params["w_emb"]); put("b_emb", params["b_emb"])
    put("w_out", params["w_out"]); put("b_out", params["b_out"])
    put("cos", cos); put("sin", sin_signed)
    for l in range(L):
        put(f"sa_wqkv{l}", params["sa_wqkv"][l]); put(f"sa_bqkv{l}", params["sa_bqkv"][l])
        put(f"sa_wo{l}", params["sa_wo"][l]);     put(f"sa_bo{l}", params["sa_bo"][l])
        put(f"ca_wv{l}", params["ca_wv"][l]);     put(f"ca_bv{l}", params["ca_bv"][l])
        put(f"ca_wo{l}", params["ca_wo"][l]);     put(f"ca_bo{l}", params["ca_bo"][l])
        put(f"ln_w{l}", params["ln_w"][l]);       put(f"ln_b{l}", params["ln_b"][l])
        put(f"ff_w1{l}", params["ff_w1"][l]);     put(f"ff_b1{l}", params["ff_b1"][l])
        put(f"ff_w2{l}", params["ff_w2"][l]);     put(f"ff_b2{l}", params["ff_b2"][l])
    return jnp.asarray(slab)


def decoder_forward(x, zq, slab):
    b, seq = x.shape
    x3 = x.reshape(b, seq, 1).astype(jnp.float32)
    zq3 = zq.reshape(b, 1, D).astype(jnp.float32)

    kernel = functools.partial(decoder_kernel, nheads=H, nlayers=L, seq=seq, dmodel=D)
    out = pl.pallas_call(
        kernel,
        grid=(b,),                       # batch-parallel grid (2-TC split on v7x;
                                         # single-TC parts see 2 cheap serial steps)
        in_specs=[
            pl.BlockSpec((1, seq, 1), lambda i: (i, 0, 0)),
            pl.BlockSpec((1, 1, D), lambda i: (i, 0, 0)),
            pl.BlockSpec((SLAB_ROWS, SLAB_LANES), lambda i: (0, 0)),   # one param DMA
        ],
        out_specs=pl.BlockSpec((1, 1, seq), lambda i: (i, 0, 0)),      # lane-dense out
        out_shape=jax.ShapeDtypeStruct((b, 1, seq), jnp.float32),
        compiler_params=pltpu.CompilerParams(dimension_semantics=("parallel",)),
    )(x3, zq3, slab)
    return out.reshape(b, seq, 1)        # back to the module's (b, seq_len, 1) layout


if __name__ == "__main__":
    key = jax.random.PRNGKey(0)
    k1, k2, k3 = jax.random.split(key, 3)
    x = jax.random.normal(k1, (B, S), jnp.float32)      # (b, seq_len)
    zq = jax.random.normal(k2, (B, D), jnp.float32)     # (b, latent_ndim)
    params = make_params(k3)
    cos, sin_signed = rotary_tables(S, D)
    slab = build_slab(params, cos, sin_signed)

    recon_x = decoder_forward(x, zq, slab)
    recon_x = jax.block_until_ready(recon_x)

    assert recon_x.shape == (B, S, 1)
    assert bool(jnp.all(jnp.isfinite(recon_x)))
    assert bool(jnp.all(jnp.abs(recon_x) <= 1.0))       # Tanh output range
    print("KERNEL_OK")
</pallas_src>

<mosaic_0001>
module attributes {stable_mosaic.version = 11 : i64} {
  func.func @decoder_kernel(%arg0: i32, %arg1: memref<1x8x1xf32, #tpu.memory_space<vmem>>, %arg2: memref<1x1x32xf32, #tpu.memory_space<vmem>>, %arg3: memref<760x128xf32, #tpu.memory_space<vmem>>, %arg4: memref<1x1x8xf32, #tpu.memory_space<vmem>>) attributes {dimension_semantics = [#tpu.dimension_semantics<parallel>], iteration_bounds = array<i64: 2>, scalar_prefetch = 0 : i64, scratch_operands = 0 : i64, tpu.core_type = #tpu.core_type<tc>, window_params = [{transform_indices = @transform_0, window_bounds = array<i64: 1, 8, 1>}, {transform_indices = @transform_1, window_bounds = array<i64: 1, 1, 32>}, {pipeline_mode = #tpu.pipeline_mode<synchronous>, transform_indices = @transform_2, window_bounds = array<i64: 760, 128>}, {transform_indices = @transform_3, window_bounds = array<i64: 1, 1, 8>}]} {
    %c0 = arith.constant 0 : index
    %c0_0 = arith.constant 0 : index
    %c0_1 = arith.constant 0 : index
    %0 = vector.load %arg1[%c0, %c0_0, %c0_1] : memref<1x8x1xf32, #tpu.memory_space<vmem>>, vector<1x8x1xf32>
    %1 = vector.shape_cast %0 : vector<1x8x1xf32> to vector<8x1xf32>
    %c8 = arith.constant 8 : index
    %c0_2 = arith.constant 0 : index
    %2 = vector.load %arg3[%c8, %c0_2] : memref<760x128xf32, #tpu.memory_space<vmem>>, vector<1x32xf32>
    %3 = vector.broadcast %1 : vector<8x1xf32> to vector<8x32xf32>
    %4 = vector.broadcast %2 : vector<1x32xf32> to vector<8x32xf32>
    %5 = arith.mulf %3, %4 : vector<8x32xf32>
    %c16 = arith.constant 16 : index
    %c0_3 = arith.constant 0 : index
    %6 = vector.load %arg3[%c16, %c0_3] : memref<760x128xf32, #tpu.memory_space<vmem>>, vector<1x32xf32>
    %7 = vector.broadcast %6 : vector<1x32xf32> to vector<8x32xf32>
    %8 = arith.addf %5, %7 : vector<8x32xf32>
    %9 = arith.negf %8 : vector<8x32xf32>
    %10 = math.exp %9 : vector<8x32xf32>
    %cst = arith.constant 1.000000e+00 : f32
    %11 = vector.broadcast %cst : f32 to vector<8x32xf32>
    %12 = arith.addf %11, %10 : vector<8x32xf32>
    %13 = arith.divf %11, %12 : vector<8x32xf32>
    %14 = arith.mulf %8, %13 : vector<8x32xf32>
    %c1_i32 = arith.constant 1 : i32
    %15 = tpu.dynamic_rotate %14 by %c1_i32 dim 0 : vector<8x32xf32>, i32 -> vector<8x32xf32>
    %16 = tpu.iota {dimensions = array<i32: 0>} : vector<8x32xi32>
    %c0_4 = arith.constant 0 : index
    %c0_5 = arith.constant 0 : index
    %17 = vector.load %arg3[%c0_4, %c0_5] : memref<760x128xf32, #tpu.memory_space<vmem>>, vector<1x32xf32>
    %18 = vector.shape_cast %17 : vector<1x32xf32> to vector<1x32xf32>
    %19 = vector.broadcast %18 : vector<1x32xf32> to vector<8x32xf32>
    %c0_i32 = arith.constant 0 : i32
    %20 = vector.broadcast %c0_i32 : i32 to vector<8x32xi32>
    %21 = arith.cmpi eq, %16, %20 : vector<8x32xi32>
    %22 = arith.select %21, %19, %15 : vector<8x32xi1>, vector<8x32xf32>
    %23 = tpu.iota {dimensions = array<i32: 1>} : vector<8x32xi32>
    %c1_i32_6 = arith.constant 1 : i32
    %24 = vector.broadcast %c1_i32_6 : i32 to vector<8x32xi32>
    %25 = arith.andi %23, %24 : vector<8x32xi32>
    %c0_i32_7 = arith.constant 0 : i32
    %26 = vector.broadcast %c0_i32_7 : i32 to vector<8x32xi32>
    %27 = arith.cmpi eq, %25, %26 : vector<8x32xi32>
    %c31_i32 = arith.constant 31 : i32
    %28 = tpu.dynamic_rotate %22 by %c31_i32 dim 1 : vector<8x32xf32>, i32 -> vector<8x32xf32>
    %c1_i32_8 = arith.constant 1 : i32
    %29 = tpu.dynamic_rotate %22 by %c1_i32_8 dim 1 : vector<8x32xf32>, i32 -> vector<8x32xf32>
    %30 = arith.select %27, %28, %29 : vector<8x32xi1>, vector<8x32xf32>
    %c40 = arith.constant 40 : index
    %c0_9 = arith.constant 0 : index
    %31 = vector.load %arg3[%c40, %c0_9] : memref<760x128xf32, #tpu.memory_space<vmem>>, vector<8x32xf32>
    %32 = arith.mulf %22, %31 : vector<8x32xf32>
    %c48 = arith.constant 48 : index
    %c0_10 = arith.constant 0 : index
    %33 = vector.load %arg3[%c48, %c0_10] : memref<760x128xf32, #tpu.memory_space<vmem>>, vector<8x32xf32>
    %34 = arith.mulf %30, %33 : vector<8x32xf32>
    %35 = arith.addf %32, %34 : vector<8x32xf32>
    %c0_11 = arith.constant 0 : index
    %c0_12 = arith.constant 0 : index
    %c0_13 = arith.constant 0 : index
    %36 = vector.load %arg2[%c0_11, %c0_12, %c0_13] : memref<1x1x32xf32, #tpu.memory_space<vmem>>, vector<1x1x32xf32>
    %37 = vector.shape_cast %36 : vector<1x1x32xf32> to vector<1x32xf32>
    %c216 = arith.constant 216 : index
    %c0_14 = arith.constant 0 : index
    %38 = vector.load %arg3[%c216, %c0_14] : memref<760x128xf32, #tpu.memory_space<vmem>>, vector<3x32xf32>
    %c224 = arith.constant 224 : index
    %c0_15 = arith.constant 0 : index
    %39 = vector.load %arg3[%c224, %c0_15] : memref<760x128xf32, #tpu.memory_space<vmem>>, vector<3x32xf32>
    %c56 = arith.constant 56 : index
    %c0_16 = arith.constant 0 : index
    %40 = vector.load %arg3[%c56, %c0_16] : memref<760x128xf32, #tpu.memory_space<vmem>>, vector<32x96xf32>
    %cst_17 = arith.constant dense<0.000000e+00> : vector<8x96xf32>
    %41 = tpu.matmul %35, %40, %cst_17 {dimension_numbers = #tpu.dot_dimension_numbers<[1], [0], [0], [1], [0, 0, 1, 1], [], []>} : vector<8x32xf32>, vector<32x96xf32>, vector<8x96xf32> -> vector<8x96xf32>
    %c88 = arith.constant 88 : index
    %c0_18 = arith.constant 0 : index
    %42 = vector.load %arg3[%c88, %c0_18] : memref<760x128xf32, #tpu.memory_space<vmem>>, vector<1x96xf32>
    %43 = vector.broadcast %42 : vector<1x96xf32> to vector<8x96xf32>
    %44 = arith.addf %41, %43 : vector<8x96xf32>
    %c96 = arith.constant 96 : index
    %c0_19 = arith.constant 0 : index
    %45 = vector.load %arg3[%c96, %c0_19] : memref<760x128xf32, #tpu.memory_space<vmem>>, vector<32x32xf32>
    %c128 = arith.constant 128 : index
    %c0_20 = arith.constant 0 : index
    %46 = vector.load %arg3[%c128, %c0_20] : memref<760x128xf32, #tpu.memory_space<vmem>>, vector<1x32xf32>
    %47 = vector.extract_strided_slice %44 {offsets = [0, 0], sizes = [8, 8], strides = [1, 1]} : vector<8x96xf32> to vector<8x8xf32>
    %48 = vector.extract_strided_slice %44 {offsets = [0, 32], sizes = [8, 8], strides = [1, 1]} : vector<8x96xf32> to vector<8x8xf32>
    %49 = vector.extract_strided_slice %44 {offsets = [0, 64], sizes = [8, 8], strides = [1, 1]} : vector<8x96xf32> to vector<8x8xf32>
    %cst_21 = arith.constant dense<0.000000e+00> : vector<8x8xf32>
    %50 = tpu.matmul %47, %48, %cst_21 {dimension_numbers = #tpu.dot_dimension_numbers<[1], [1], [0], [0], [0, 0, 1, 0], [], []>} : vector<8x8xf32>, vector<8x8xf32>, vector<8x8xf32> -> vector<8x8xf32>
    %cst_22 = arith.constant 0.353553385 : f32
    %51 = vector.broadcast %cst_22 : f32 to vector<8x8xf32>
    %52 = arith.mulf %50, %51 : vector<8x8xf32>
    %cst_23 = arith.constant dense<0xFF800000> : vector<8xf32>
    %53 = vector.multi_reduction <maximumf>, %52, %cst_23 [1] : vector<8x8xf32> to vector<8xf32>
    %54 = vector.shape_cast %53 : vector<8xf32> to vector<8x1xf32>
    %55 = vector.broadcast %54 : vector<8x1xf32> to vector<8x8xf32>
    %56 = arith.subf %52, %55 : vector<8x8xf32>
    %57 = math.exp %56 : vector<8x8xf32>
    %cst_24 = arith.constant dense<0.000000e+00> : vector<8xf32>
    %58 = vector.multi_reduction <add>, %57, %cst_24 [1] : vector<8x8xf32> to vector<8xf32>
    %59 = vector.shape_cast %58 : vector<8xf32> to vector<8x1xf32>
    %60 = vector.broadcast %59 : vector<8x1xf32> to vector<8x8xf32>
    %61 = arith.divf %57, %60 : vector<8x8xf32>
    %cst_25 = arith.constant dense<0.000000e+00> : vector<8x8xf32>
    %62 = tpu.matmul %61, %49, %cst_25 {dimension_numbers = #tpu.dot_dimension_numbers<[1], [0], [0], [1], [0, 0, 1, 1], [], []>} : vector<8x8xf32>, vector<8x8xf32>, vector<8x8xf32> -> vector<8x8xf32>
    %63 = vector.extract_strided_slice %45 {offsets = [0, 0], sizes = [8, 32], strides = [1, 1]} : vector<32x32xf32> to vector<8x32xf32>
    %cst_26 = arith.constant dense<0.000000e+00> : vector<8x32xf32>
    %64 = tpu.matmul %62, %63, %cst_26 {dimension_numbers = #tpu.dot_dimension_numbers<[1], [0], [0], [1], [0, 0, 1, 1], [], []>} : vector<8x8xf32>, vector<8x32xf32>, vector<8x32xf32> -> vector<8x32xf32>
    %65 = vector.broadcast %46 : vector<1x32xf32> to vector<8x32xf32>
    %66 = arith.addf %65, %64 : vector<8x32xf32>
    %67 = vector.extract_strided_slice %44 {offsets = [0, 8], sizes = [8, 8], strides = [1, 1]} : vector<8x96xf32> to vector<8x8xf32>
    %68 = vector.extract_strided_slice %44 {offsets = [0, 40], sizes = [8, 8], strides = [1, 1]} : vector<8x96xf32> to vector<8x8xf32>
    %69 = vector.extract_strided_slice %44 {offsets = [0, 72], sizes = [8, 8], strides = [1, 1]} : vector<8x96xf32> to vector<8x8xf32>
    %cst_27 = arith.constant dense<0.000000e+00> : vector<8x8xf32>
    %70 = tpu.matmul %67, %68, %cst_27 {dimension_numbers = #tpu.dot_dimension_numbers<[1], [1], [0], [0], [0, 0, 1, 0], [], []>} : vector<8x8xf32>, vector<8x8xf32>, vector<8x8xf32> -> vector<8x8xf32>
    %cst_28 = arith.constant 0.353553385 : f32
    %71 = vector.broadcast %cst_28 : f32 to vector<8x8xf32>
    %72 = arith.mulf %70, %71 : vector<8x8xf32>
    %cst_29 = arith.constant dense<0xFF800000> : vector<8xf32>
    %73 = vector.multi_reduction <maximumf>, %72, %cst_29 [1] : vector<8x8xf32> to vector<8xf32>
    %74 = vector.shape_cast %73 : vector<8xf32> to vector<8x1xf32>
    %75 = vector.broadcast %74 : vector<8x1xf32> to vector<8x8xf32>
    %76 = arith.subf %72, %75 : vector<8x8xf32>
    %77 = math.exp %76 : vector<8x8xf32>
    %cst_30 = arith.constant dense<0.000000e+00> : vector<8xf32>
    %78 = vector.multi_reduction <add>, %77, %cst_30 [1] : vector<8x8xf32> to vector<8xf32>
    %79 = vector.shape_cast %78 : vector<8xf32> to vector<8x1xf32>
    %80 = vector.broadcast %79 : vector<8x1xf32> to vector<8x8xf32>
    %81 = arith.divf %77, %80 : vector<8x8xf32>
    %cst_31 = arith.constant dense<0.000000e+00> : vector<8x8xf32>
    %82 = tpu.matmul %81, %69, %cst_31 {dimension_numbers = #tpu.dot_dimension_numbers<[1], [0], [0], [1], [0, 0, 1, 1], [], []>} : vector<8x8xf32>, vector<8x8xf32>, vector<8x8xf32> -> vector<8x8xf32>
    %83 = vector.extract_strided_slice %45 {offsets = [8, 0], sizes = [8, 32], strides = [1, 1]} : vector<32x32xf32> to vector<8x32xf32>
    %cst_32 = arith.constant dense<0.000000e+00> : vector<8x32xf32>
    %84 = tpu.matmul %82, %83, %cst_32 {dimension_numbers = #tpu.dot_dimension_numbers<[1], [0], [0], [1], [0, 0, 1, 1], [], []>} : vector<8x8xf32>, vector<8x32xf32>, vector<8x32xf32> -> vector<8x32xf32>
    %85 = arith.addf %66, %84 : vector<8x32xf32>
    %86 = vector.extract_strided_slice %44 {offsets = [0, 16], sizes = [8, 8], strides = [1, 1]} : vector<8x96xf32> to vector<8x8xf32>
    %87 = vector.extract_strided_slice %44 {offsets = [0, 48], sizes = [8, 8], strides = [1, 1]} : vector<8x96xf32> to vector<8x8xf32>
    %88 = vector.extract_strided_slice %44 {offsets = [0, 80], sizes = [8, 8], strides = [1, 1]} : vector<8x96xf32> to vector<8x8xf32>
    %cst_33 = arith.constant dense<0.000000e+00> : vector<8x8xf32>
    %89 = tpu.matmul %86, %87, %cst_33 {dimension_numbers = #tpu.dot_dimension_numbers<[1], [1], [0], [0], [0, 0, 1, 0], [], []>} : vector<8x8xf32>, vector<8x8xf32>, vector<8x8xf32> -> vector<8x8xf32>
    %cst_34 = arith.constant 0.353553385 : f32
    %90 = vector.broadcast %cst_34 : f32 to vector<8x8xf32>
    %91 = arith.mulf %89, %90 : vector<8x8xf32>
    %cst_35 = arith.constant dense<0xFF800000> : vector<8xf32>
    %92 = vector.multi_reduction <maximumf>, %91, %cst_35 [1] : vector<8x8xf32> to vector<8xf32>
    %93 = vector.shape_cast %92 : vector<8xf32> to vector<8x1xf32>
    %94 = vector.broadcast %93 : vector<8x1xf32> to vector<8x8xf32>
    %95 = arith.subf %91, %94 : vector<8x8xf32>
    %96 = math.exp %95 : vector<8x8xf32>
    %cst_36 = arith.constant dense<0.000000e+00> : vector<8xf32>
    %97 = vector.multi_reduction <add>, %96, %cst_36 [1] : vector<8x8xf32> to vector<8xf32>
    %98 = vector.shape_cast %97 : vector<8xf32> to vector<8x1xf32>
    %99 = vector.broadcast %98 : vector<8x1xf32> to vector<8x8xf32>
    %100 = arith.divf %96, %99 : vector<8x8xf32>
    %cst_37 = arith.constant dense<0.000000e+00> : vector<8x8xf32>
    %101 = tpu.matmul %100, %88, %cst_37 {dimension_numbers = #tpu.dot_dimension_numbers<[1], [0], [0], [1], [0, 0, 1, 1], [], []>} : vector<8x8xf32>, vector<8x8xf32>, vector<8x8xf32> -> vector<8x8xf32>
    %102 = vector.extract_strided_slice %45 {offsets = [16, 0], sizes = [8, 32], strides = [1, 1]} : vector<32x32xf32> to vector<8x32xf32>
    %cst_38 = arith.constant dense<0.000000e+00> : vector<8x32xf32>
    %103 = tpu.matmul %101, %102, %cst_38 {dimension_numbers = #tpu.dot_dimension_numbers<[1], [0], [0], [1], [0, 0, 1, 1], [], []>} : vector<8x8xf32>, vector<8x32xf32>, vector<8x32xf32> -> vector<8x32xf32>
    %104 = arith.addf %85, %103 : vector<8x32xf32>
    %105 = vector.extract_strided_slice %44 {offsets = [0, 24], sizes = [8, 8], strides = [1, 1]} : vector<8x96xf32> to vector<8x8xf32>
    %106 = vector.extract_strided_slice %44 {offsets = [0, 56], sizes = [8, 8], strides = [1, 1]} : vector<8x96xf32> to vector<8x8xf32>
    %107 = vector.extract_strided_slice %44 {offsets = [0, 88], sizes = [8, 8], strides = [1, 1]} : vector<8x96xf32> to vector<8x8xf32>
    %cst_39 = arith.constant dense<0.000000e+00> : vector<8x8xf32>
    %108 = tpu.matmul %105, %106, %cst_39 {dimension_numbers = #tpu.dot_dimension_numbers<[1], [1], [0], [0], [0, 0, 1, 0], [], []>} : vector<8x8xf32>, vector<8x8xf32>, vector<8x8xf32> -> vector<8x8xf32>
    %cst_40 = arith.constant 0.353553385 : f32
    %109 = vector.broadcast %cst_40 : f32 to vector<8x8xf32>
    %110 = arith.mulf %108, %109 : vector<8x8xf32>
    %cst_41 = arith.constant dense<0xFF800000> : vector<8xf32>
    %111 = vector.multi_reduction <maximumf>, %110, %cst_41 [1] : vector<8x8xf32> to vector<8xf32>
    %112 = vector.shape_cast %111 : vector<8xf32> to vector<8x1xf32>
    %113 = vector.broadcast %112 : vector<8x1xf32> to vector<8x8xf32>
    %114 = arith.subf %110, %113 : vector<8x8xf32>
    %115 = math.exp %114 : vector<8x8xf32>
    %cst_42 = arith.constant dense<0.000000e+00> : vector<8xf32>
    %116 = vector.multi_reduction <add>, %115, %cst_42 [1] : vector<8x8xf32> to vector<8xf32>
    %117 = vector.shape_cast %116 : vector<8xf32> to vector<8x1xf32>
    %118 = vector.broadcast %117 : vector<8x1xf32> to vector<8x8xf32>
    %119 = arith.divf %115, %118 : vector<8x8xf32>
    %cst_43 = arith.constant dense<0.000000e+00> : vector<8x8xf32>
    %120 = tpu.matmul %119, %107, %cst_43 {dimension_numbers = #tpu.dot_dimension_numbers<[1], [0], [0], [1], [0, 0, 1, 1], [], []>} : vector<8x8xf32>, vector<8x8xf32>, vector<8x8xf32> -> vector<8x8xf32>
    %121 = vector.extract_strided_slice %45 {offsets = [24, 0], sizes = [8, 32], strides = [1, 1]} : vector<32x32xf32> to vector<8x32xf32>
    %cst_44 = arith.constant dense<0.000000e+00> : vector<8x32xf32>
    %122 = tpu.matmul %120, %121, %cst_44 {dimension_numbers = #tpu.dot_dimension_numbers<[1], [0], [0], [1], [0, 0, 1, 1], [], []>} : vector<8x8xf32>, vector<8x32xf32>, vector<8x32xf32> -> vector<8x32xf32>
    %123 = arith.addf %104, %122 : vector<8x32xf32>
    %124 = arith.addf %35, %123 : vector<8x32xf32>
    %125 = vector.extract_strided_slice %38 {offsets = [0, 0], sizes = [1, 32], strides = [1, 1]} : vector<3x32xf32> to vector<1x32xf32>
    %126 = vector.extract_strided_slice %39 {offsets = [0, 0], sizes = [1, 32], strides = [1, 1]} : vector<3x32xf32> to vector<1x32xf32>
    %cst_45 = arith.constant dense<0.000000e+00> : vector<8xf32>
    %127 = vector.multi_reduction <add>, %124, %cst_45 [1] : vector<8x32xf32> to vector<8xf32>
    %128 = vector.shape_cast %127 : vector<8xf32> to vector<8x1xf32>
    %cst_46 = arith.constant 3.200000e+01 : f32
    %129 = vector.broadcast %cst_46 : f32 to vector<8x1xf32>
    %130 = arith.divf %128, %129 : vector<8x1xf32>
    %131 = vector.broadcast %130 : vector<8x1xf32> to vector<8x32xf32>
    %132 = arith.subf %124, %131 : vector<8x32xf32>
    %133 = arith.mulf %132, %132 : vector<8x32xf32>
    %cst_47 = arith.constant dense<0.000000e+00> : vector<8xf32>
    %134 = vector.multi_reduction <add>, %133, %cst_47 [1] : vector<8x32xf32> to vector<8xf32>
    %135 = vector.shape_cast %134 : vector<8xf32> to vector<8x1xf32>
    %cst_48 = arith.constant 3.200000e+01 : f32
    %136 = vector.broadcast %cst_48 : f32 to vector<8x1xf32>
    %137 = arith.divf %135, %136 : vector<8x1xf32>
    %138 = vector.broadcast %130 : vector<8x1xf32> to vector<8x32xf32>
    %139 = arith.subf %124, %138 : vector<8x32xf32>
    %cst_49 = arith.constant 9.99999974E-6 : f32
    %140 = vector.broadcast %cst_49 : f32 to vector<8x1xf32>
    %141 = arith.addf %137, %140 : vector<8x1xf32>
    %142 = math.rsqrt %141 : vector<8x1xf32>
    %143 = vector.broadcast %142 : vector<8x1xf32> to vector<8x32xf32>
    %144 = arith.mulf %139, %143 : vector<8x32xf32>
    %145 = vector.broadcast %125 : vector<1x32xf32> to vector<8x32xf32>
    %146 = arith.mulf %144, %145 : vector<8x32xf32>
    %147 = vector.broadcast %126 : vector<1x32xf32> to vector<8x32xf32>
    %148 = arith.addf %146, %147 : vector<8x32xf32>
    %c136 = arith.constant 136 : index
    %c0_50 = arith.constant 0 : index
    %149 = vector.load %arg3[%c136, %c0_50] : memref<760x128xf32, #tpu.memory_space<vmem>>, vector<32x32xf32>
    %cst_51 = arith.constant dense<0.000000e+00> : vector<1x32xf32>
    %150 = tpu.matmul %37, %149, %cst_51 {dimension_numbers = #tpu.dot_dimension_numbers<[1], [0], [0], [1], [0, 0, 1, 1], [], []>} : vector<1x32xf32>, vector<32x32xf32>, vector<1x32xf32> -> vector<1x32xf32>
    %c168 = arith.constant 168 : index
    %c0_52 = arith.constant 0 : index
    %151 = vector.load %arg3[%c168, %c0_52] : memref<760x128xf32, #tpu.memory_space<vmem>>, vector<1x32xf32>
    %152 = arith.addf %150, %151 : vector<1x32xf32>
    %c176 = arith.constant 176 : index
    %c0_53 = arith.constant 0 : index
    %153 = vector.load %arg3[%c176, %c0_53] : memref<760x128xf32, #tpu.memory_space<vmem>>, vector<32x32xf32>
    %cst_54 = arith.constant dense<0.000000e+00> : vector<1x32xf32>
    %154 = tpu.matmul %152, %153, %cst_54 {dimension_numbers = #tpu.dot_dimension_numbers<[1], [0], [0], [1], [0, 0, 1, 1], [], []>} : vector<1x32xf32>, vector<32x32xf32>, vector<1x32xf32> -> vector<1x32xf32>
    %c208 = arith.constant 208 : index
    %c0_55 = arith.constant 0 : index
    %155 = vector.load %arg3[%c208, %c0_55] : memref<760x128xf32, #tpu.memory_space<vmem>>, vector<1x32xf32>
    %156 = arith.addf %154, %155 : vector<1x32xf32>
    %157 = vector.shape_cast %156 : vector<1x32xf32> to vector<1x32xf32>
    %158 = vector.broadcast %157 : vector<1x32xf32> to vector<8x32xf32>
    %159 = arith.addf %148, %158 : vector<8x32xf32>
    %160 = vector.extract_strided_slice %38 {offsets = [1, 0], sizes = [1, 32], strides = [1, 1]} : vector<3x32xf32> to vector<1x32xf32>
    %161 = vector.extract_strided_slice %39 {offsets = [1, 0], sizes = [1, 32], strides = [1, 1]} : vector<3x32xf32> to vector<1x32xf32>
    %cst_56 = arith.constant dense<0.000000e+00> : vector<8xf32>
    %162 = vector.multi_reduction <add>, %159, %cst_56 [1] : vector<8x32xf32> to vector<8xf32>
    %163 = vector.shape_cast %162 : vector<8xf32> to vector<8x1xf32>
    %cst_57 = arith.constant 3.200000e+01 : f32
    %164 = vector.broadcast %cst_57 : f32 to vector<8x1xf32>
    %165 = arith.divf %163, %164 : vector<8x1xf32>
    %166 = vector.broadcast %165 : vector<8x1xf32> to vector<8x32xf32>
    %167 = arith.subf %159, %166 : vector<8x32xf32>
    %168 = arith.mulf %167, %167 : vector<8x32xf32>
    %cst_58 = arith.constant dense<0.000000e+00> : vector<8xf32>
    %169 = vector.multi_reduction <add>, %168, %cst_58 [1] : vector<8x32xf32> to vector<8xf32>
    %170 = vector.shape_cast %169 : vector<8xf32> to vector<8x1xf32>
    %cst_59 = arith.constant 3.200000e+01 : f32
    %171 = vector.broadcast %cst_59 : f32 to vector<8x1xf32>
    %172 = arith.divf %170, %171 : vector<8x1xf32>
    %173 = vector.broadcast %165 : vector<8x1xf32> to vector<8x32xf32>
    %174 = arith.subf %159, %173 : vector<8x32xf32>
    %cst_60 = arith.constant 9.99999974E-6 : f32
    %175 = vector.broadcast %cst_60 : f32 to vector<8x1xf32>
    %176 = arith.addf %172, %175 : vector<8x1xf32>
    %177 = math.rsqrt %176 : vector<8x1xf32>
    %178 = vector.broadcast %177 : vector<8x1xf32> to vector<8x32xf32>
    %179 = arith.mulf %174, %178 : vector<8x32xf32>
    %180 = vector.broadcast %160 : vector<1x32xf32> to vector<8x32xf32>
    %181 = arith.mulf %179, %180 : vector<8x32xf32>
    %182 = vector.broadcast %161 : vector<1x32xf32> to vector<8x32xf32>
    %183 = arith.addf %181, %182 : vector<8x32xf32>
    %c232 = arith.constant 232 : index
    %c0_61 = arith.constant 0 : index
    %184 = vector.load %arg3[%c232, %c0_61] : memref<760x128xf32, #tpu.memory_space<vmem>>, vector<32x128xf32>
    %cst_62 = arith.constant dense<0.000000e+00> : vector<8x128xf32>
    %185 = tpu.matmul %183, %184, %cst_62 {dimension_numbers = #tpu.dot_dimension_numbers<[1], [0], [0], [1], [0, 0, 1, 1], [], []>} : vector<8x32xf32>, vector<32x128xf32>, vector<8x128xf32> -> vector<8x128xf32>
    %c264 = arith.constant 264 : index
    %c0_63 = arith.constant 0 : index
    %186 = vector.load %arg3[%c264, %c0_63] : memref<760x128xf32, #tpu.memory_space<vmem>>, vector<1x128xf32>
    %187 = vector.broadcast %186 : vector<1x128xf32> to vector<8x128xf32>
    %188 = arith.addf %185, %187 : vector<8x128xf32>
    %cst_64 = arith.constant 0.000000e+00 : f32
    %189 = vector.broadcast %cst_64 : f32 to vector<8x128xf32>
    %190 = arith.maximumf %188, %189 : vector<8x128xf32>
    %c272 = arith.constant 272 : index
    %c0_65 = arith.constant 0 : index
    %191 = vector.load %arg3[%c272, %c0_65] : memref<760x128xf32, #tpu.memory_space<vmem>>, vector<128x32xf32>
    %cst_66 = arith.constant dense<0.000000e+00> : vector<8x32xf32>
    %192 = tpu.matmul %190, %191, %cst_66 {dimension_numbers = #tpu.dot_dimension_numbers<[1], [0], [0], [1], [0, 0, 1, 1], [], []>} : vector<8x128xf32>, vector<128x32xf32>, vector<8x32xf32> -> vector<8x32xf32>
    %c400 = arith.constant 400 : index
    %c0_67 = arith.constant 0 : index
    %193 = vector.load %arg3[%c400, %c0_67] : memref<760x128xf32, #tpu.memory_space<vmem>>, vector<1x32xf32>
    %194 = vector.broadcast %193 : vector<1x32xf32> to vector<8x32xf32>
    %195 = arith.addf %192, %194 : vector<8x32xf32>
    %196 = arith.addf %183, %195 : vector<8x32xf32>
    %197 = vector.extract_strided_slice %38 {offsets = [2, 0], sizes = [1, 32], strides = [1, 1]} : vector<3x32xf32> to vector<1x32xf32>
    %198 = vector.extract_strided_slice %39 {offsets = [2, 0], sizes = [1, 32], strides = [1, 1]} : vector<3x32xf32> to vector<1x32xf32>
    %cst_68 = arith.constant dense<0.000000e+00> : vector<8xf32>
    %199 = vector.multi_reduction <add>, %196, %cst_68 [1] : vector<8x32xf32> to vector<8xf32>
    %200 = vector.shape_cast %199 : vector<8xf32> to vector<8x1xf32>
    %cst_69 = arith.constant 3.200000e+01 : f32
    %201 = vector.broadcast %cst_69 : f32 to vector<8x1xf32>
    %202 = arith.divf %200, %201 : vector<8x1xf32>
    %203 = vector.broadcast %202 : vector<8x1xf32> to vector<8x32xf32>
    %204 = arith.subf %196, %203 : vector<8x32xf32>
    %205 = arith.mulf %204, %204 : vector<8x32xf32>
    %cst_70 = arith.constant dense<0.000000e+00> : vector<8xf32>
    %206 = vector.multi_reduction <add>, %205, %cst_70 [1] : vector<8x32xf32> to vector<8xf32>
    %207 = vector.shape_cast %206 : vector<8xf32> to vector<8x1xf32>
    %cst_71 = arith.constant 3.200000e+01 : f32
    %208 = vector.broadcast %cst_71 : f32 to vector<8x1xf32>
    %209 = arith.divf %207, %208 : vector<8x1xf32>
    %210 = vector.broadcast %202 : vector<8x1xf32> to vector<8x32xf32>
    %211 = arith.subf %196, %210 : vector<8x32xf32>
    %cst_72 = arith.constant 9.99999974E-6 : f32
    %212 = vector.broadcast %cst_72 : f32 to vector<8x1xf32>
    %213 = arith.addf %209, %212 : vector<8x1xf32>
    %214 = math.rsqrt %213 : vector<8x1xf32>
    %215 = vector.broadcast %214 : vector<8x1xf32> to vector<8x32xf32>
    %216 = arith.mulf %211, %215 : vector<8x32xf32>
    %217 = vector.broadcast %197 : vector<1x32xf32> to vector<8x32xf32>
    %218 = arith.mulf %216, %217 : vector<8x32xf32>
    %219 = vector.broadcast %198 : vector<1x32xf32> to vector<8x32xf32>
    %220 = arith.addf %218, %219 : vector<8x32xf32>
    %c568 = arith.constant 568 : index
    %c0_73 = arith.constant 0 : index
    %221 = vector.load %arg3[%c568, %c0_73] : memref<760x128xf32, #tpu.memory_space<vmem>>, vector<3x32xf32>
    %c576 = arith.constant 576 : index
    %c0_74 = arith.constant 0 : index
    %222 = vector.load %arg3[%c576, %c0_74] : memref<760x128xf32, #tpu.memory_space<vmem>>, vector<3x32xf32>
    %c408 = arith.constant 408 : index
    %c0_75 = arith.constant 0 : index
    %223 = vector.load %arg3[%c408, %c0_75] : memref<760x128xf32, #tpu.memory_space<vmem>>, vector<32x96xf32>
    %cst_76 = arith.constant dense<0.000000e+00> : vector<8x96xf32>
    %224 = tpu.matmul %220, %223, %cst_76 {dimension_numbers = #tpu.dot_dimension_numbers<[1], [0], [0], [1], [0, 0, 1, 1], [], []>} : vector<8x32xf32>, vector<32x96xf32>, vector<8x96xf32> -> vector<8x96xf32>
    %c440 = arith.constant 440 : index
    %c0_77 = arith.constant 0 : index
    %225 = vector.load %arg3[%c440, %c0_77] : memref<760x128xf32, #tpu.memory_space<vmem>>, vector<1x96xf32>
    %226 = vector.broadcast %225 : vector<1x96xf32> to vector<8x96xf32>
    %227 = arith.addf %224, %226 : vector<8x96xf32>
    %c448 = arith.constant 448 : index
    %c0_78 = arith.constant 0 : index
    %228 = vector.load %arg3[%c448, %c0_78] : memref<760x128xf32, #tpu.memory_space<vmem>>, vector<32x32xf32>
    %c480 = arith.constant 480 : index
    %c0_79 = arith.constant 0 : index
    %229 = vector.load %arg3[%c480, %c0_79] : memref<760x128xf32, #tpu.memory_space<vmem>>, vector<1x32xf32>
    %230 = vector.extract_strided_slice %227 {offsets = [0, 0], sizes = [8, 8], strides = [1, 1]} : vector<8x96xf32> to vector<8x8xf32>
    %231 = vector.extract_strided_slice %227 {offsets = [0, 32], sizes = [8, 8], strides = [1, 1]} : vector<8x96xf32> to vector<8x8xf32>
    %232 = vector.extract_strided_slice %227 {offsets = [0, 64], sizes = [8, 8], strides = [1, 1]} : vector<8x96xf32> to vector<8x8xf32>
    %cst_80 = arith.constant dense<0.000000e+00> : vector<8x8xf32>
    %233 = tpu.matmul %230, %231, %cst_80 {dimension_numbers = #tpu.dot_dimension_numbers<[1], [1], [0], [0], [0, 0, 1, 0], [], []>} : vector<8x8xf32>, vector<8x8xf32>, vector<8x8xf32> -> vector<8x8xf32>
    %cst_81 = arith.constant 0.353553385 : f32
    %234 = vector.broadcast %cst_81 : f32 to vector<8x8xf32>
    %235 = arith.mulf %233, %234 : vector<8x8xf32>
    %cst_82 = arith.constant dense<0xFF800000> : vector<8xf32>
    %236 = vector.multi_reduction <maximumf>, %235, %cst_82 [1] : vector<8x8xf32> to vector<8xf32>
    %237 = vector.shape_cast %236 : vector<8xf32> to vector<8x1xf32>
    %238 = vector.broadcast %237 : vector<8x1xf32> to vector<8x8xf32>
    %239 = arith.subf %235, %238 : vector<8x8xf32>
    %240 = math.exp %239 : vector<8x8xf32>
    %cst_83 = arith.constant dense<0.000000e+00> : vector<8xf32>
    %241 = vector.multi_reduction <add>, %240, %cst_83 [1] : vector<8x8xf32> to vector<8xf32>
    %242 = vector.shape_cast %241 : vector<8xf32> to vector<8x1xf32>
    %243 = vector.broadcast %242 : vector<8x1xf32> to vector<8x8xf32>
    %244 = arith.divf %240, %243 : vector<8x8xf32>
    %cst_84 = arith.constant dense<0.000000e+00> : vector<8x8xf32>
    %245 = tpu.matmul %244, %232, %cst_84 {dimension_numbers = #tpu.dot_dimension_numbers<[1], [0], [0], [1], [0, 0, 1, 1], [], []>} : vector<8x8xf32>, vector<8x8xf32>, vector<8x8xf32> -> vector<8x8xf32>
    %246 = vector.extract_strided_slice %228 {offsets = [0, 0], sizes = [8, 32], strides = [1, 1]} : vector<32x32xf32> to vector<8x32xf32>
    %cst_85 = arith.constant dense<0.000000e+00> : vector<8x32xf32>
    %247 = tpu.matmul %245, %246, %cst_85 {dimension_numbers = #tpu.dot_dimension_numbers<[1], [0], [0], [1], [0, 0, 1, 1], [], []>} : vector<8x8xf32>, vector<8x32xf32>, vector<8x32xf32> -> vector<8x32xf32>
    %248 = vector.broadcast %229 : vector<1x32xf32> to vector<8x32xf32>
    %249 = arith.addf %248, %247 : vector<8x32xf32>
    %250 = vector.extract_strided_slice %227 {offsets = [0, 8], sizes = [8, 8], strides = [1, 1]} : vector<8x96xf32> to vector<8x8xf32>
    %251 = vector.extract_strided_slice %227 {offsets = [0, 40], sizes = [8, 8], strides = [1, 1]} : vector<8x96xf32> to vector<8x8xf32>
    %252 = vector.extract_strided_slice %227 {offsets = [0, 72], sizes = [8, 8], strides = [1, 1]} : vector<8x96xf32> to vector<8x8xf32>
    %cst_86 = arith.constant dense<0.000000e+00> : vector<8x8xf32>
    %253 = tpu.matmul %250, %251, %cst_86 {dimension_numbers = #tpu.dot_dimension_numbers<[1], [1], [0], [0], [0, 0, 1, 0], [], []>} : vector<8x8xf32>, vector<8x8xf32>, vector<8x8xf32> -> vector<8x8xf32>
    %cst_87 = arith.constant 0.353553385 : f32
    %254 = vector.broadcast %cst_87 : f32 to vector<8x8xf32>
    %255 = arith.mulf %253, %254 : vector<8x8xf32>
    %cst_88 = arith.constant dense<0xFF800000> : vector<8xf32>
    %256 = vector.multi_reduction <maximumf>, %255, %cst_88 [1] : vector<8x8xf32> to vector<8xf32>
    %257 = vector.shape_cast %256 : vector<8xf32> to vector<8x1xf32>
    %258 = vector.broadcast %257 : vector<8x1xf32> to vector<8x8xf32>
    %259 = arith.subf %255, %258 : vector<8x8xf32>
    %260 = math.exp %259 : vector<8x8xf32>
    %cst_89 = arith.constant dense<0.000000e+00> : vector<8xf32>
    %261 = vector.multi_reduction <add>, %260, %cst_89 [1] : vector<8x8xf32> to vector<8xf32>
    %262 = vector.shape_cast %261 : vector<8xf32> to vector<8x1xf32>
    %263 = vector.broadcast %262 : vector<8x1xf32> to vector<8x8xf32>
    %264 = arith.divf %260, %263 : vector<8x8xf32>
    %cst_90 = arith.constant dense<0.000000e+00> : vector<8x8xf32>
    %265 = tpu.matmul %264, %252, %cst_90 {dimension_numbers = #tpu.dot_dimension_numbers<[1], [0], [0], [1], [0, 0, 1, 1], [], []>} : vector<8x8xf32>, vector<8x8xf32>, vector<8x8xf32> -> vector<8x8xf32>
    %266 = vector.extract_strided_slice %228 {offsets = [8, 0], sizes = [8, 32], strides = [1, 1]} : vector<32x32xf32> to vector<8x32xf32>
    %cst_91 = arith.constant dense<0.000000e+00> : vector<8x32xf32>
    %267 = tpu.matmul %265, %266, %cst_91 {dimension_numbers = #tpu.dot_dimension_numbers<[1], [0], [0], [1], [0, 0, 1, 1], [], []>} : vector<8x8xf32>, vector<8x32xf32>, vector<8x32xf32> -> vector<8x32xf32>
    %268 = arith.addf %249, %267 : vector<8x32xf32>
    %269 = vector.extract_strided_slice %227 {offsets = [0, 16], sizes = [8, 8], strides = [1, 1]} : vector<8x96xf32> to vector<8x8xf32>
    %270 = vector.extract_strided_slice %227 {offsets = [0, 48], sizes = [8, 8], strides = [1, 1]} : vector<8x96xf32> to vector<8x8xf32>
    %271 = vector.extract_strided_slice %227 {offsets = [0, 80], sizes = [8, 8], strides = [1, 1]} : vector<8x96xf32> to vector<8x8xf32>
    %cst_92 = arith.constant dense<0.000000e+00> : vector<8x8xf32>
    %272 = tpu.matmul %269, %270, %cst_92 {dimension_numbers = #tpu.dot_dimension_numbers<[1], [1], [0], [0], [0, 0, 1, 0], [], []>} : vector<8x8xf32>, vector<8x8xf32>, vector<8x8xf32> -> vector<8x8xf32>
    %cst_93 = arith.constant 0.353553385 : f32
    %273 = vector.broadcast %cst_93 : f32 to vector<8x8xf32>
    %274 = arith.mulf %272, %273 : vector<8x8xf32>
    %cst_94 = arith.constant dense<0xFF800000> : vector<8xf32>
    %275 = vector.multi_reduction <maximumf>, %274, %cst_94 [1] : vector<8x8xf32> to vector<8xf32>
    %276 = vector.shape_cast %275 : vector<8xf32> to vector<8x1xf32>
    %277 = vector.broadcast %276 : vector<8x1xf32> to vector<8x8xf32>
    %278 = arith.subf %274, %277 : vector<8x8xf32>
    %279 = math.exp %278 : vector<8x8xf32>
    %cst_95 = arith.constant dense<0.000000e+00> : vector<8xf32>
    %280 = vector.multi_reduction <add>, %279, %cst_95 [1] : vector<8x8xf32> to vector<8xf32>
    %281 = vector.shape_cast %280 : vector<8xf32> to vector<8x1xf32>
    %282 = vector.broadcast %281 : vector<8x1xf32> to vector<8x8xf32>
    %283 = arith.divf %279, %282 : vector<8x8xf32>
    %cst_96 = arith.constant dense<0.000000e+00> : vector<8x8xf32>
    %284 = tpu.matmul %283, %271, %cst_96 {dimension_numbers = #tpu.dot_dimension_numbers<[1], [0], [0], [1], [0, 0, 1, 1], [], []>} : vector<8x8xf32>, vector<8x8xf32>, vector<8x8xf32> -> vector<8x8xf32>
    %285 = vector.extract_strided_slice %228 {offsets = [16, 0], sizes = [8, 32], strides = [1, 1]} : vector<32x32xf32> to vector<8x32xf32>
    %cst_97 = arith.constant dense<0.000000e+00> : vector<8x32xf32>
    %286 = tpu.matmul %284, %285, %cst_97 {dimension_numbers = #tpu.dot_dimension_numbers<[1], [0], [0], [1], [0, 0, 1, 1], [], []>} : vector<8x8xf32>, vector<8x32xf32>, vector<8x32xf32> -> vector<8x32xf32>
    %287 = arith.addf %268, %286 : vector<8x32xf32>
    %288 = vector.extract_strided_slice %227 {offsets = [0, 24], sizes = [8, 8], strides = [1, 1]} : vector<8x96xf32> to vector<8x8xf32>
    %289 = vector.extract_strided_slice %227 {offsets = [0, 56], sizes = [8, 8], strides = [1, 1]} : vector<8x96xf32> to vector<8x8xf32>
    %290 = vector.extract_strided_slice %227 {offsets = [0, 88], sizes = [8, 8], strides = [1, 1]} : vector<8x96xf32> to vector<8x8xf32>
    %cst_98 = arith.constant dense<0.000000e+00> : vector<8x8xf32>
    %291 = tpu.matmul %288, %289, %cst_98 {dimension_numbers = #tpu.dot_dimension_numbers<[1], [1], [0], [0], [0, 0, 1, 0], [], []>} : vector<8x8xf32>, vector<8x8xf32>, vector<8x8xf32> -> vector<8x8xf32>
    %cst_99 = arith.constant 0.353553385 : f32
    %292 = vector.broadcast %cst_99 : f32 to vector<8x8xf32>
    %293 = arith.mulf %291, %292 : vector<8x8xf32>
    %cst_100 = arith.constant dense<0xFF800000> : vector<8xf32>
    %294 = vector.multi_reduction <maximumf>, %293, %cst_100 [1] : vector<8x8xf32> to vector<8xf32>
    %295 = vector.shape_cast %294 : vector<8xf32> to vector<8x1xf32>
    %296 = vector.broadcast %295 : vector<8x1xf32> to vector<8x8xf32>
    %297 = arith.subf %293, %296 : vector<8x8xf32>
    %298 = math.exp %297 : vector<8x8xf32>
    %cst_101 = arith.constant dense<0.000000e+00> : vector<8xf32>
    %299 = vector.multi_reduction <add>, %298, %cst_101 [1] : vector<8x8xf32> to vector<8xf32>
    %300 = vector.shape_cast %299 : vector<8xf32> to vector<8x1xf32>
    %301 = vector.broadcast %300 : vector<8x1xf32> to vector<8x8xf32>
    %302 = arith.divf %298, %301 : vector<8x8xf32>
    %cst_102 = arith.constant dense<0.000000e+00> : vector<8x8xf32>
    %303 = tpu.matmul %302, %290, %cst_102 {dimension_numbers = #tpu.dot_dimension_numbers<[1], [0], [0], [1], [0, 0, 1, 1], [], []>} : vector<8x8xf32>, vector<8x8xf32>, vector<8x8xf32> -> vector<8x8xf32>
    %304 = vector.extract_strided_slice %228 {offsets = [24, 0], sizes = [8, 32], strides = [1, 1]} : vector<32x32xf32> to vector<8x32xf32>
    %cst_103 = arith.constant dense<0.000000e+00> : vector<8x32xf32>
    %305 = tpu.matmul %303, %304, %cst_103 {dimension_numbers = #tpu.dot_dimension_numbers<[1], [0], [0], [1], [0, 0, 1, 1], [], []>} : vector<8x8xf32>, vector<8x32xf32>, vector<8x32xf32> -> vector<8x32xf32>
    %306 = arith.addf %287, %305 : vector<8x32xf32>
    %307 = arith.addf %220, %306 : vector<8x32xf32>
    %308 = vector.extract_strided_slice %221 {offsets = [0, 0], sizes = [1, 32], strides = [1, 1]} : vector<3x32xf32> to vector<1x32xf32>
    %309 = vector.extract_strided_slice %222 {offsets = [0, 0], sizes = [1, 32], strides = [1, 1]} : vector<3x32xf32> to vector<1x32xf32>
    %cst_104 = arith.constant dense<0.000000e+00> : vector<8xf32>
    %310 = vector.multi_reduction <add>, %307, %cst_104 [1] : vector<8x32xf32> to vector<8xf32>
    %311 = vector.shape_cast %310 : vector<8xf32> to vector<8x1xf32>
    %cst_105 = arith.constant 3.200000e+01 : f32
    %312 = vector.broadcast %cst_105 : f32 to vector<8x1xf32>
    %313 = arith.divf %311, %312 : vector<8x1xf32>
    %314 = vector.broadcast %313 : vector<8x1xf32> to vector<8x32xf32>
    %315 = arith.subf %307, %314 : vector<8x32xf32>
    %316 = arith.mulf %315, %315 : vector<8x32xf32>
    %cst_106 = arith.constant dense<0.000000e+00> : vector<8xf32>
    %317 = vector.multi_reduction <add>, %316, %cst_106 [1] : vector<8x32xf32> to vector<8xf32>
    %318 = vector.shape_cast %317 : vector<8xf32> to vector<8x1xf32>
    %cst_107 = arith.constant 3.200000e+01 : f32
    %319 = vector.broadcast %cst_107 : f32 to vector<8x1xf32>
    %320 = arith.divf %318, %319 : vector<8x1xf32>
    %321 = vector.broadcast %313 : vector<8x1xf32> to vector<8x32xf32>
    %322 = arith.subf %307, %321 : vector<8x32xf32>
    %cst_108 = arith.constant 9.99999974E-6 : f32
    %323 = vector.broadcast %cst_108 : f32 to vector<8x1xf32>
    %324 = arith.addf %320, %323 : vector<8x1xf32>
    %325 = math.rsqrt %324 : vector<8x1xf32>
    %326 = vector.broadcast %325 : vector<8x1xf32> to vector<8x32xf32>
    %327 = arith.mulf %322, %326 : vector<8x32xf32>
    %328 = vector.broadcast %308 : vector<1x32xf32> to vector<8x32xf32>
    %329 = arith.mulf %327, %328 : vector<8x32xf32>
    %330 = vector.broadcast %309 : vector<1x32xf32> to vector<8x32xf32>
    %331 = arith.addf %329, %330 : vector<8x32xf32>
    %c488 = arith.constant 488 : index
    %c0_109 = arith.constant 0 : index
    %332 = vector.load %arg3[%c488, %c0_109] : memref<760x128xf32, #tpu.memory_space<vmem>>, vector<32x32xf32>
    %cst_110 = arith.constant dense<0.000000e+00> : vector<1x32xf32>
    %333 = tpu.matmul %37, %332, %cst_110 {dimension_numbers = #tpu.dot_dimension_numbers<[1], [0], [0], [1], [0, 0, 1, 1], [], []>} : vector<1x32xf32>, vector<32x32xf32>, vector<1x32xf32> -> vector<1x32xf32>
    %c520 = arith.constant 520 : index
    %c0_111 = arith.constant 0 : index
    %334 = vector.load %arg3[%c520, %c0_111] : memref<760x128xf32, #tpu.memory_space<vmem>>, vector<1x32xf32>
    %335 = arith.addf %333, %334 : vector<1x32xf32>
    %c528 = arith.constant 528 : index
    %c0_112 = arith.constant 0 : index
    %336 = vector.load %arg3[%c528, %c0_112] : memref<760x128xf32, #tpu.memory_space<vmem>>, vector<32x32xf32>
    %cst_113 = arith.constant dense<0.000000e+00> : vector<1x32xf32>
    %337 = tpu.matmul %335, %336, %cst_113 {dimension_numbers = #tpu.dot_dimension_numbers<[1], [0], [0], [1], [0, 0, 1, 1], [], []>} : vector<1x32xf32>, vector<32x32xf32>, vector<1x32xf32> -> vector<1x32xf32>
    %c560 = arith.constant 560 : index
    %c0_114 = arith.constant 0 : index
    %338 = vector.load %arg3[%c560, %c0_114] : memref<760x128xf32, #tpu.memory_space<vmem>>, vector<1x32xf32>
    %339 = arith.addf %337, %338 : vector<1x32xf32>
    %340 = vector.shape_cast %339 : vector<1x32xf32> to vector<1x32xf32>
    %341 = vector.broadcast %340 : vector<1x32xf32> to vector<8x32xf32>
    %342 = arith.addf %331, %341 : vector<8x32xf32>
    %343 = vector.extract_strided_slice %221 {offsets = [1, 0], sizes = [1, 32], strides = [1, 1]} : vector<3x32xf32> to vector<1x32xf32>
    %344 = vector.extract_strided_slice %222 {offsets = [1, 0], sizes = [1, 32], strides = [1, 1]} : vector<3x32xf32> to vector<1x32xf32>
    %cst_115 = arith.constant dense<0.000000e+00> : vector<8xf32>
    %345 = vector.multi_reduction <add>, %342, %cst_115 [1] : vector<8x32xf32> to vector<8xf32>
    %346 = vector.shape_cast %345 : vector<8xf32> to vector<8x1xf32>
    %cst_116 = arith.constant 3.200000e+01 : f32
    %347 = vector.broadcast %cst_116 : f32 to vector<8x1xf32>
    %348 = arith.divf %346, %347 : vector<8x1xf32>
    %349 = vector.broadcast %348 : vector<8x1xf32> to vector<8x32xf32>
    %350 = arith.subf %342, %349 : vector<8x32xf32>
    %351 = arith.mulf %350, %350 : vector<8x32xf32>
    %cst_117 = arith.constant dense<0.000000e+00> : vector<8xf32>
    %352 = vector.multi_reduction <add>, %351, %cst_117 [1] : vector<8x32xf32> to vector<8xf32>
    %353 = vector.shape_cast %352 : vector<8xf32> to vector<8x1xf32>
    %cst_118 = arith.constant 3.200000e+01 : f32
    %354 = vector.broadcast %cst_118 : f32 to vector<8x1xf32>
    %355 = arith.divf %353, %354 : vector<8x1xf32>
    %356 = vector.broadcast %348 : vector<8x1xf32> to vector<8x32xf32>
    %357 = arith.subf %342, %356 : vector<8x32xf32>
    %cst_119 = arith.constant 9.99999974E-6 : f32
    %358 = vector.broadcast %cst_119 : f32 to vector<8x1xf32>
    %359 = arith.addf %355, %358 : vector<8x1xf32>
    %360 = math.rsqrt %359 : vector<8x1xf32>
    %361 = vector.broadcast %360 : vector<8x1xf32> to vector<8x32xf32>
    %362 = arith.mulf %357, %361 : vector<8x32xf32>
    %363 = vector.broadcast %343 : vector<1x32xf32> to vector<8x32xf32>
    %364 = arith.mulf %362, %363 : vector<8x32xf32>
    %365 = vector.broadcast %344 : vector<1x32xf32> to vector<8x32xf32>
    %366 = arith.addf %364, %365 : vector<8x32xf32>
    %c584 = arith.constant 584 : index
    %c0_120 = arith.constant 0 : index
    %367 = vector.load %arg3[%c584, %c0_120] : memref<760x128xf32, #tpu.memory_space<vmem>>, vector<32x128xf32>
    %cst_121 = arith.constant dense<0.000000e+00> : vector<8x128xf32>
    %368 = tpu.matmul %366, %367, %cst_121 {dimension_numbers = #tpu.dot_dimension_numbers<[1], [0], [0], [1], [0, 0, 1, 1], [], []>} : vector<8x32xf32>, vector<32x128xf32>, vector<8x128xf32> -> vector<8x128xf32>
    %c616 = arith.constant 616 : index
    %c0_122 = arith.constant 0 : index
    %369 = vector.load %arg3[%c616, %c0_122] : memref<760x128xf32, #tpu.memory_space<vmem>>, vector<1x128xf32>
    %370 = vector.broadcast %369 : vector<1x128xf32> to vector<8x128xf32>
    %371 = arith.addf %368, %370 : vector<8x128xf32>
    %cst_123 = arith.constant 0.000000e+00 : f32
    %372 = vector.broadcast %cst_123 : f32 to vector<8x128xf32>
    %373 = arith.maximumf %371, %372 : vector<8x128xf32>
    %c624 = arith.constant 624 : index
    %c0_124 = arith.constant 0 : index
    %374 = vector.load %arg3[%c624, %c0_124] : memref<760x128xf32, #tpu.memory_space<vmem>>, vector<128x32xf32>
    %cst_125 = arith.constant dense<0.000000e+00> : vector<8x32xf32>
    %375 = tpu.matmul %373, %374, %cst_125 {dimension_numbers = #tpu.dot_dimension_numbers<[1], [0], [0], [1], [0, 0, 1, 1], [], []>} : vector<8x128xf32>, vector<128x32xf32>, vector<8x32xf32> -> vector<8x32xf32>
    %c752 = arith.constant 752 : index
    %c0_126 = arith.constant 0 : index
    %376 = vector.load %arg3[%c752, %c0_126] : memref<760x128xf32, #tpu.memory_space<vmem>>, vector<1x32xf32>
    %377 = vector.broadcast %376 : vector<1x32xf32> to vector<8x32xf32>
    %378 = arith.addf %375, %377 : vector<8x32xf32>
    %379 = arith.addf %366, %378 : vector<8x32xf32>
    %380 = vector.extract_strided_slice %221 {offsets = [2, 0], sizes = [1, 32], strides = [1, 1]} : vector<3x32xf32> to vector<1x32xf32>
    %381 = vector.extract_strided_slice %222 {offsets = [2, 0], sizes = [1, 32], strides = [1, 1]} : vector<3x32xf32> to vector<1x32xf32>
    %cst_127 = arith.constant dense<0.000000e+00> : vector<8xf32>
    %382 = vector.multi_reduction <add>, %379, %cst_127 [1] : vector<8x32xf32> to vector<8xf32>
    %383 = vector.shape_cast %382 : vector<8xf32> to vector<8x1xf32>
    %cst_128 = arith.constant 3.200000e+01 : f32
    %384 = vector.broadcast %cst_128 : f32 to vector<8x1xf32>
    %385 = arith.divf %383, %384 : vector<8x1xf32>
    %386 = vector.broadcast %385 : vector<8x1xf32> to vector<8x32xf32>
    %387 = arith.subf %379, %386 : vector<8x32xf32>
    %388 = arith.mulf %387, %387 : vector<8x32xf32>
    %cst_129 = arith.constant dense<0.000000e+00> : vector<8xf32>
    %389 = vector.multi_reduction <add>, %388, %cst_129 [1] : vector<8x32xf32> to vector<8xf32>
    %390 = vector.shape_cast %389 : vector<8xf32> to vector<8x1xf32>
    %cst_130 = arith.constant 3.200000e+01 : f32
    %391 = vector.broadcast %cst_130 : f32 to vector<8x1xf32>
    %392 = arith.divf %390, %391 : vector<8x1xf32>
    %393 = vector.broadcast %385 : vector<8x1xf32> to vector<8x32xf32>
    %394 = arith.subf %379, %393 : vector<8x32xf32>
    %cst_131 = arith.constant 9.99999974E-6 : f32
    %395 = vector.broadcast %cst_131 : f32 to vector<8x1xf32>
    %396 = arith.addf %392, %395 : vector<8x1xf32>
    %397 = math.rsqrt %396 : vector<8x1xf32>
    %398 = vector.broadcast %397 : vector<8x1xf32> to vector<8x32xf32>
    %399 = arith.mulf %394, %398 : vector<8x32xf32>
    %400 = vector.broadcast %380 : vector<1x32xf32> to vector<8x32xf32>
    %401 = arith.mulf %399, %400 : vector<8x32xf32>
    %402 = vector.broadcast %381 : vector<1x32xf32> to vector<8x32xf32>
    %403 = arith.addf %401, %402 : vector<8x32xf32>
    %c24 = arith.constant 24 : index
    %c0_132 = arith.constant 0 : index
    %404 = vector.load %arg3[%c24, %c0_132] : memref<760x128xf32, #tpu.memory_space<vmem>>, vector<1x32xf32>
    %cst_133 = arith.constant dense<0.000000e+00> : vector<1x8xf32>
    %405 = tpu.matmul %404, %403, %cst_133 {dimension_numbers = #tpu.dot_dimension_numbers<[1], [1], [0], [0], [0, 0, 1, 0], [], []>} : vector<1x32xf32>, vector<8x32xf32>, vector<1x8xf32> -> vector<1x8xf32>
    %c32 = arith.constant 32 : index
    %c0_134 = arith.constant 0 : index
    %406 = vector.load %arg3[%c32, %c0_134] : memref<760x128xf32, #tpu.memory_space<vmem>>, vector<1x1xf32>
    %407 = vector.broadcast %406 : vector<1x1xf32> to vector<1x8xf32>
    %408 = arith.addf %405, %407 : vector<1x8xf32>
    %409 = arith.negf %408 : vector<1x8xf32>
    %410 = math.exp %409 : vector<1x8xf32>
    %cst_135 = arith.constant 1.000000e+00 : f32
    %411 = vector.broadcast %cst_135 : f32 to vector<1x8xf32>
    %412 = arith.addf %411, %410 : vector<1x8xf32>
    %413 = arith.divf %411, %412 : vector<1x8xf32>
    %414 = arith.mulf %408, %413 : vector<1x8xf32>
    %415 = math.tanh %414 : vector<1x8xf32>
    %c0_136 = arith.constant 0 : index
    %c0_137 = arith.constant 0 : index
    %c0_138 = arith.constant 0 : index
    %416 = vector.load %arg4[%c0_136, %c0_137, %c0_138] : memref<1x1x8xf32, #tpu.memory_space<vmem>>, vector<1x1x8xf32>
    %417 = vector.shape_cast %416 : vector<1x1x8xf32> to vector<1x8xf32>
    %418 = vector.shape_cast %415 : vector<1x8xf32> to vector<1x1x8xf32>
    tpu.vector_store %arg4[%c0_136, %c0_137, %c0_138], %418 {strides = array<i32>} : memref<1x1x8xf32, #tpu.memory_space<vmem>>, vector<1x1x8xf32>,
    return
  }
  func.func @transform_0(%arg0: i32) -> (i32, i32, i32) {
    %c0_i32 = arith.constant 0 : i32
    %c0_i32_0 = arith.constant 0 : i32
    %c0_i32_1 = arith.constant 0 : i32
    return %arg0, %c0_i32, %c0_i32_0 : i32, i32, i32
  }
  func.func @transform_1(%arg0: i32) -> (i32, i32, i32) {
    %c0_i32 = arith.constant 0 : i32
    %c0_i32_0 = arith.constant 0 : i32
    %c0_i32_1 = arith.constant 0 : i32
    return %arg0, %c0_i32, %c0_i32_0 : i32, i32, i32
  }
  func.func @transform_2(%arg0: i32) -> (i32, i32) {
    %c0_i32 = arith.constant 0 : i32
    %c0_i32_0 = arith.constant 0 : i32
    %c0_i32_1 = arith.constant 0 : i32
    return %c0_i32, %c0_i32_0 : i32, i32
  }
  func.func @transform_3(%arg0: i32) -> (i32, i32, i32) {
    %c0_i32 = arith.constant 0 : i32
    %c0_i32_0 = arith.constant 0 : i32
    %c0_i32_1 = arith.constant 0 : i32
    return %arg0, %c0_i32, %c0_i32_0 : i32, i32, i32
  }
}

</mosaic_0001>

<bundles_post_ra>
// kernel: tpu_custom_call.1
= control target key start
LH: loop header
LB: loop body
LE: loop exit
PB: predicated region body
PF: predicated region fallthrough
CT: control target
= control target key end

     0   :  { %8 = vsyncpa [#allocation3], 0  ;;  %s4544_s0 = inlined_call_operand.vmem [shape: f32[2,8,1], index: 0, kind: input, shape index: {}]   ;;  %s4545_s1 = inlined_call_operand.vmem [shape: f32[2,1,32], index: 1, kind: input, shape index: {}]   ;;  %s4546_s2 = inlined_call_operand.hbm [shape: f32[760,128], index: 2, kind: input, shape index: {}]   ;;  %s4547_s3 = inlined_call_operand.hbm [shape: f32[2,1,8], index: 3, kind: output, shape index: {}]  }
   0x1   :  { %9 = vsyncpa [#allocation4], 0 }
   0x2   :  { %11 = vsyncpa [#allocation4 + $0x1], 0  ;;  %s4082_s12 = smov 0   ;;  %s4084_s13 = smov 0  }
   0x3   :  { %s4086_s14 = smov 0   ;;  %s4088_s15 = smov 0  }
   0x4 LB: > { %s4103_s16 = sadd.s32 4294967295, %s4039_s15   ;;  %s3352_s17 = sadd.s32 4294967294, %s4039_s15   ;;  %s4039_s15 = sphi %s4088_s15, %s4555_s15   ;;  %s4035_s14 = sphi %s4086_s14, %s4554_s14   ;;  %s4031_s13 = sphi %s4084_s13, %s4553_s13   ;;  %s4027_s12 = sphi %s4082_s12, %s4552_s12  }
   0x5   : > { %s4107_s18 = sadd.s32 1, %s4039_s15   ;;  %s97_s19 = sadd.s32 1, %s4035_s14 }
   0x6   : > { %s94_s20 = ssub.s32 %s4039_s15, %s4107_s18  ;;  %p107_p0 = scmp.ne.s32.totalorder %s4035_s14, %s4031_s13 }
   0x7   : > { %p95_p1 = scmp.eq.s32.totalorder %s94_s20, 0  ;;  %p108_p2 = scmp.eq.s32.totalorder %s4103_s16, 1 }
   0x8   : > { %p113_p3 = scmp.ne.s32.totalorder %s4031_s13, %s4027_s12  ;;  %p114_p4 = scmp.eq.s32.totalorder %s3352_s17, 1 }
   0x9   : > { %s4118_s21 = scalar_select %p95_p1, %s4035_s14, %s97_s19  }
   0xa   : > { %p4120_p5 = por %p108_p2, %p107_p0  ;;  %p4124_p6 = por %p114_p4, %p113_p3 }
   0xb   : > { %p3353_p7 = scmp.ge.s32.totalorder %s4039_s15, 1  ;;  %p121_p8 = scmp.lt.s32.totalorder %s4039_s15, 3 }
   0xc   : > { %s4549_s23 = scalar_select %p4124_p6, 1, 0 }
   0xd   : > { %p3838_p9 = scmp.eq.s32.totalorder %s4103_s16, 0  ;;  %p4131_p10 = pnand %p3353_p7, %p121_p8 }
   0xe   : > { %s4041_s25 = smov [#allocation2]  }
   0xf   : > { %s133_s26 = sshll.u32 %s4041_s25, 4  ;;  %p3830_p11 = pneg %p4131_p10  ;;  %s134_s26 = int_to_ptr.vmem [resolvable:$true] %s133_s26 }
  0x10   : > { %s3960_s27 = scalar_lea.vmem %s134_s26, 12160  ;;  %p3968_p3 = scmp.lt.s32.totalorder %s134_s26, %s134_s26 }
  0x11   : > { %p3831_p12 = pnand %p3838_p9, %p3830_p11  ;;  %p3961_p0 = scmp.ne.s32.totalorder %s134_s26, %s3960_s27 }
  0x12   : > { %p3969_p4 = scmp.lt.s32.totalorder %s3960_s27, %s3960_s27 }
  0x13   : > { %p3951_p13 = pneg %p3831_p12 }
  0x14   : > { %p3970_p6 = por %p3969_p4, %p3968_p3 }
  0x15   : > { %p3963_p1 = pnand %p3961_p0, %p3951_p13 }
  0x17   : > { %p3964_p2 = pneg %p3963_p1 }
  0x19   : > { %p3971_p7 = pnand %p3970_p6, %p3964_p2 }
  0x1b   : > { %3974 = shalt.err (!%p3971_p7)
}
  0x1c   : > { %s4042_s28 = smov 128   ;;  %s4043_s29 = smov 8  }
  0x1d   : > { %3833 = dma.hbm_to_vmem [thread:$0]  (!%p3831_p12), %s4546_s2, 12160, %s134_s26, [#allocation3], %s4042_s28, %s4042_s28, %s4043_s29  }
  0x1e   : > { %162 = sbr.rel (%p4131_p10) target bundleno = 9138 (0x23b2), region = 32 }
  0x23   : > { %4018 = dma.done.wait (%p3838_p9), [#allocation3], 12160  }
  0x24   : > { %4020 = vsyncadd (%p3838_p9), [#allocation3], 4294955136  ;;  %p187_p8 = scmp.lt.s32.totalorder %s4103_s16, 1  ;;  %v4044_v0 = vmov 0   ;;  %v3359_v2 = vld [vmem:[#allocation2 + $0x8] ss:$0 sm:$0xff]  ;;  %v220_v10 = vlaneseq }
  0x25   : > { %3893 = vset.pattern.permute.xlu0 %v4044_v0  ;;  %3894 = vset.pattern.permute.xlu1 %v4044_v0  ;;  %v3360_v3 = vld [vmem:[#allocation2 + $0x10] ss:$0 sm:$0xff]  ;;  %v3362_v14 = vld [vmem:[#allocation2] ss:$0 sm:$0xff]  ;;  %s4045_s10 = smov 32   ;;  %v4046_v18 = vmov 0.0  }
  0x26   : > { %s4150_s5 = scalar_select %p187_p8, %s4103_s16, 1  ;;  %v4156_v11 = vshrl.u32 %v220_v10, 7  ;;  %v259_v17 = vld [vmem:[#allocation2 + $0x50] sm:$0xff]  ;;  %3541 = vmatprep.subr.mxu0 %v4046_v18  ;;  %3552 = vmatprep.subr.mxu1 %v4046_v18  ;;  %vm233_vm1 = vcmask 1047808   ;;  %v258_v21 = vld [vmem:[#allocation2 + $0x48] sm:$0xff]  ;;  %v257_v22 = vld [vmem:[#allocation2 + $0x40] sm:$0xff] }
  0x27   : > { %3542 = vmatpush3.msra.mxu0 %v259_v17  ;;  %v256_v23 = vld [vmem:[#allocation2 + $0x38] sm:$0xff]  ;;  %vm4047_vm2 = vmmov 0   ;;  %s4048_s11 = smov 97   ;;  %s4049_s17 = smov 127   ;;  %v230_v26 = vand.u32 127, %v220_v10  ;;  %v248_v28 = vld [vmem:[#allocation2 + $0x28] sm:$0xff] }
  0x28   : > { %s3358_s6 = sshll.u32 %s4150_s5, 3  ;;  %vm227_vm0 = vcmp.eq.s32.totalorder %v4156_v11, 0  ;;  %3543 = vmatprep.subr.mxu0 %v4046_v18  ;;  %3549 = vmatprep.mubr.msk.f32.mxu0 %vm4047_vm2, %v4046_v18  ;;  %v250_v29 = vld [vmem:[#allocation2 + $0x30] sm:$0xff]  ;;  %vm265_vm4 = vcmask 261120   ;;  %v3363_v36 = vld [vmem:[#allocation2 + $0x58] ss:$0 sm:$0xff] }
  0x29   : > { %s190_s9 = scalar_lea.vmem %s4544_s0, %s3358_s6  ;;  %3544 = vmatpush3.msra.mxu0 %v258_v21  ;;  %3554 = vmatprep.mubr.msk.f32.mxu1 %vm4047_vm2, %v4046_v18  ;;  %v231_v27 = vand.u32 1, %v230_v26  ;;  %s4050_s19 = smov 96   ;;  %vm347_vm5 = vcmask 64512   ;;  %v339_v56 = vld [vmem:[#allocation2 + $0x60] sm:$0xff]  ;;  %vm3261_vm6 = vcmask 57344  }
  0x2a   : > { %v194_v1 = vld [vmem:[%s190_s9] sm:$0xff]  ;;  %3545 = vmatprep.subr.mxu0 %v4046_v18  ;;  %s4051_s20 = smov 64   ;;  %s4052_s24 = smov 120  }
  0x2b   : > { %198 = vperm.xlu0 %3893, %v194_v1   ;;  %3546 = vmatpush3.msra.mxu0 %v257_v22  ;;  %vm232_vm3 = vcmp.eq.s32.totalorder %v231_v27, 0  ;;  %s4053_s25 = smov 88   ;;  %s4054_s26 = smov 80   ;;  %v3369_v27 = vld [vmem:[#allocation2 + $0x80] ss:$0 sm:$0xff] }
  0x2c   : > { %3547 = vmatprep.subr.mxu0 %v4046_v18  ;;  %s4055_s27 = smov 112   ;;  %s4056_s28 = smov 56  }
  0x2d   : > { %3548 = vmatpush3.msra.mxu0 %v256_v23  ;;  %s4057_s29 = smov 48   ;;  %s4058_s30 = smov 104  }
  0x2e   : > { %3562 = vmatprep.subr.mxu0 %v4046_v18  ;;  %s4059_s4 = smov 72   ;;  %s4060_s6 = smov 40  }
  0x2f   : > { %s193_s9 = scalar_lea.vmem %s4545_s1, %s4150_s5  ;;  %s185_s5 = sand.u32 1, %s4031_s13  }
  0xa6   : > { %v199_v4 = vpop.permute.xlu0 %198 }
  0xa7   : > { %v205_v5 = vmul.f32 %v3359_v2, %v199_v4 }
  0xa9   : > { %v211_v6 = vadd.f32 %v3360_v3, %v205_v5 }
  0xab   : > { %v3361_v7 = vmul.f32 -1.442695, %v211_v6 }
  0xad   : > { %3895 = vpow2.f32 %v3361_v7 }
  0xba   : > { %v3896_v8 = vpop.eup %3895 }
  0xbb   : > { %v215_v9 = vadd.f32 1.0, %v3896_v8 }
  0xbd   : > { %3897 = vrcp.f32 %v215_v9 }
  0xca   : > { %v3898_v12 = vpop.eup %3897 }
  0xcb   : > { %v218_v13 = vmul.f32 %v3898_v12, %v211_v6 }
  0xcd   : > { %v219_v15 = vrot.slane %v218_v13, 7  ;;  %v340_v13 = vld [vmem:[#allocation2 + $0x68] sm:$0xff] }
  0xcf   : > { %v228_v16 = vsel %vm227_vm0, %v3362_v14, %v219_v15 }
  0xd0   : > { %234 = vrot.lane.b32.xlu0 %v228_v16, %s4045_s10  ;;  %v249_v33 = vmul.f32 %v248_v28, %v228_v16 }
 0x142   : > { %v235_v19 = vpop.permute.xlu0 %234 }
 0x143   : > { %v236_v20 = vsel %vm233_vm1, %v235_v19, %v228_v16 }
 0x144   : > { %237 = vrot.lane.b32.xlu1 %v236_v20, %s4045_s10  ;;  %s3414_s10 = sshll.u32 %s4103_s16, 4 }
 0x1b6   : > { %v238_v24 = vpop.permute.xlu1 %237 }
 0x1b7   : > { %v239_v25 = vsel %vm233_vm1, %v238_v24, %v228_v16 }
 0x1b8   : > { %244 = vrot.lane.b32.xlu0 %v239_v25, %s4048_s11  ;;  %241 = vrot.lane.b32.xlu1 %v239_v25, %s4049_s17  ;;  %s186_s11 = scalar_lea.vmem [#allocation5], %s185_s5 }
 0x1b9   : > { %s3276_s17 = sshll.u32 %s186_s11, 4  ;;  %s3277_s17 = int_to_ptr.vmem [resolvable:$true] %s3276_s17 }
 0x22a   : > { %v245_v30 = vpop.permute.xlu0 %244  ;;  %v242_v31 = vpop.permute.xlu1 %241 }
 0x22b   : > { %v247_v32 = vsel %vm232_vm3, %v242_v31, %v245_v30 }
 0x22c   : > { %v251_v34 = vmul.f32 %v250_v29, %v247_v32 }
 0x22e   : > { %v4171_v35 = vadd.f32 %v251_v34, %v249_v33 }
 0x230   : > { %3550 = vmatmul.mubr.msk.f32.vlgmr.msra.gmra.mxu0 %vm265_vm4, %v4171_v35 }
 0x231   : > { %3564 = vmatprep.mubr.msk.f32.mxu0 %vm4047_vm2, %v4046_v18  ;;  %3563 = vmatpush3.msra.mxu0 %v339_v56 }
 0x232   : > { %3572 = vmatprep.subr.mxu0 %v4046_v18 }
 0x2f0   : > { %v335_v37 = vpop.f32.mrf.mxu0 }
 0x2f1   : > { %v4177_v38 = vadd.f32 %v3363_v36, %v335_v37 }
 0x2f2   : > { %v3551_v39 = vpop.f32.mrf.mxu0 }
 0x2f3   : > { %345 = vrot.lane.b32.xlu1 %v4177_v38, %s4050_s19  ;;  %v341_v39 = vld [vmem:[#allocation2 + $0x70] sm:$0xff] }
 0x365   : > { %v346_v40 = vpop.permute.xlu1 %345 }
 0x366   : > { %3553 = vmatpush3.xpose.msk.msra.mxu1 %vm347_vm5, %v346_v40 }
 0x367   : > { %3557 = vmatprep.subr.mxu1 %v4046_v18 }
 0x369   : > { %3555 = vmatmul.mubr.msk.f32.vlgmr.msra.gmra.mxu1 %vm347_vm5, %v4177_v38 }
 0x36a   : > { %3559 = vmatprep.mubr.msk.f32.mxu1 %vm4047_vm2, %v4046_v18 }
 0x429   : > { %v418_v41 = vpop.f32.mrf.mxu1 }
 0x42a   : > { %v422_v42 = vmul.f32 0.35355338, %v418_v41 }
 0x42b   : > { %v3556_v43 = vpop.f32.mrf.mxu1 }
 0x42c   : > { %v423_v44 = vsel %vm347_vm5, %v422_v42, -inf }
 0x42d   : > { %424 = vmax.xlane.f32.xlu0 %v423_v44 }
 0x443   : > { %434 = vrot.lane.b32.xlu0 %v4177_v38, %s4051_s20 }
 0x447   : > { %588 = vrot.lane.b32.xlu0 %v4177_v38, %s4052_s24 }
 0x4b6   : > { %v425_v45 = vpop.xlane.xlu0 %424 }
 0x4b7   : > { %v426_v46 = vsub.f32 %v422_v42, %v425_v45 }
 0x4b9   : > { %v427_v47 = vmul.f32 1.442695, %v426_v46 }
 0x4ba   : > { %v435_v48 = vpop.permute.xlu0 %434 }
 0x4bb   : > { %3899 = vpow2.f32 %v427_v47  ;;  %3558 = vmatpush3.msra.mxu1 %v435_v48 }
 0x4bc   : > { %3567 = vmatprep.subr.mxu1 %v4046_v18 }
 0x4be   : > { %v589_v55 = vpop.permute.xlu0 %588 }
 0x4c8   : > { %v3900_v49 = vpop.eup %3899 }
 0x4c9   : > { %v429_v50 = vsel %vm347_vm5, %v3900_v49, 0.0 }
 0x4ca   : > { %430 = vadd.xlane.f32.xlu1 %v429_v50 }
 0x4db   : > { %590 = vrot.lane.b32.xlu1 %v4177_v38, %s4053_s25 }
 0x553   : > { %v431_v51 = vpop.xlane.xlu1 %430 }
 0x554   : > { %3901 = vrcp.f32 %v431_v51  ;;  %v342_v51 = vld [vmem:[#allocation2 + $0x78] sm:$0xff] }
 0x557   : > { %v591_v54 = vpop.permute.xlu1 %590 }
 0x561   : > { %v3902_v52 = vpop.eup %3901 }
 0x562   : > { %v433_v53 = vmul.f32 %v3902_v52, %v3900_v49 }
 0x564   : > { %3560 = vmatmul.mubr.msk.f32.vlgmr.msra.gmra.mxu1 %vm347_vm5, %v433_v53 }
 0x565   : > { %3568 = vmatpush3.xpose.msk.msra.mxu1 %vm347_vm5, %v591_v54  ;;  %3569 = vmatprep.mubr.msk.f32.mxu1 %vm4047_vm2, %v4046_v18 }
 0x566   : > { %3577 = vmatprep.subr.mxu1 %v4046_v18 }
 0x568   : > { %3570 = vmatmul.mubr.msk.f32.vlgmr.msra.gmra.mxu1 %vm347_vm5, %v589_v55 }
 0x569   : > { %3579 = vmatprep.mubr.msk.f32.mxu1 %vm4047_vm2, %v4046_v18  ;;  %3578 = vmatpush3.msra.mxu1 %v340_v13 }
 0x56a   : > { %3587 = vmatprep.subr.mxu1 %v4046_v18 }
 0x624   : > { %v506_v57 = vpop.f32.mrf.mxu1 }
 0x625   : > { %3565 = vmatmul.mubr.msk.f32.vlgmr.msra.gmra.mxu0 %vm347_vm5, %v506_v57 }
 0x626   : > { %v3561_v58 = vpop.f32.mrf.mxu1  ;;  %3574 = vmatprep.mubr.msk.f32.mxu0 %vm4047_vm2, %v4046_v18 }
 0x628   : > { %v662_v59 = vpop.f32.mrf.mxu1 }
 0x629   : > { %v666_v60 = vmul.f32 0.35355338, %v662_v59  ;;  %v1335_v59 = vld [vmem:[#allocation2 + $0x98] sm:$0xff] }
 0x62a   : > { %v3571_v61 = vpop.f32.mrf.mxu1 }
 0x62b   : > { %v667_v62 = vsel %vm347_vm5, %v666_v60, -inf  ;;  %v1333_v61 = vld [vmem:[#allocation2 + $0x88] sm:$0xff] }
 0x62c   : > { %668 = vmax.xlane.f32.xlu1 %v667_v62  ;;  %v4265_v62 = vld [vmem:[%s193_s9] sm:$0x1] }
 0x63d   : > { %830 = vrot.lane.b32.xlu1 %v4177_v38, %s4054_s26 }
 0x641   : > { %828 = vrot.lane.b32.xlu1 %v4177_v38, %s4055_s27 }
 0x6b5   : > { %v669_v63 = vpop.xlane.xlu1 %668 }
 0x6b6   : > { %v670_v0 = vsub.f32 %v666_v60, %v669_v63  ;;  %v1334_v60 = vld [vmem:[#allocation2 + $0x90] sm:$0xff] }
 0x6b8   : > { %v671_v1 = vmul.f32 1.442695, %v670_v0 }
 0x6b9   : > { %v831_v9 = vpop.permute.xlu1 %830 }
 0x6ba   : > { %3903 = vpow2.f32 %v671_v1  ;;  %v1414_v1 = vld [vmem:[#allocation2 + $0xc8] sm:$0xff] }
 0x6bd   : > { %v829_v12 = vpop.permute.xlu1 %828 }
 0x6c7   : > { %v3904_v2 = vpop.eup %3903 }
 0x6c8   : > { %v673_v3 = vsel %vm347_vm5, %v3904_v2, 0.0 }
 0x6c9   : > { %674 = vadd.xlane.f32.xlu0 %v673_v3  ;;  %v1337_v3 = vld [vmem:[#allocation2 + $0xa8] sm:$0x1] }
 0x6df   : > { %678 = vrot.lane.b32.xlu0 %v4177_v38, %s4056_s28 }
 0x6e5   : > { %v579_v4 = vpop.f32.mrf.mxu0 }
 0x6e6   : > { %v587_v28 = vadd.f32 %v3369_v27, %v579_v4  ;;  %v1412_v4 = vld [vmem:[#allocation2 + $0xb8] sm:$0xff] }
 0x6e7   : > { %v3566_v5 = vpop.f32.mrf.mxu0  ;;  %v4289_v27 = vld [vmem:[#allocation2 + $0xd8] sm:$0x7] }
 0x752   : > { %v675_v6 = vpop.xlane.xlu0 %674 }
 0x753   : > { %3905 = vrcp.f32 %v675_v6 }
 0x756   : > { %v679_v7 = vpop.permute.xlu0 %678 }
 0x757   : > { %3573 = vmatpush3.msra.mxu0 %v679_v7  ;;  %v1411_v7 = vld [vmem:[#allocation2 + $0xb0] sm:$0xff] }
 0x758   : > { %3582 = vmatprep.subr.mxu0 %v4046_v18 }
 0x760   : > { %v3906_v8 = vpop.eup %3905 }
 0x761   : > { %v677_v10 = vmul.f32 %v3906_v8, %v3904_v2  ;;  %v1413_v2 = vld [vmem:[#allocation2 + $0xc0] sm:$0xff] }
 0x763   : > { %3575 = vmatmul.mubr.msk.f32.vlgmr.msra.gmra.mxu0 %vm347_vm5, %v677_v10 }
 0x764   : > { %3583 = vmatpush3.xpose.msk.msra.mxu0 %vm347_vm5, %v831_v9  ;;  %3584 = vmatprep.mubr.msk.f32.mxu0 %vm4047_vm2, %v4046_v18 }
 0x765   : > { %3592 = vmatprep.subr.mxu0 %v4046_v18 }
 0x767   : > { %3585 = vmatmul.mubr.msk.f32.vlgmr.msra.gmra.mxu0 %vm347_vm5, %v829_v12 }
 0x768   : > { %3594 = vmatprep.mubr.msk.f32.mxu0 %vm4047_vm2, %v4046_v18  ;;  %3593 = vmatpush3.msra.mxu0 %v341_v39 }
 0x769   : > { %3602 = vmatprep.subr.mxu0 %v4046_v18 }
 0x823   : > { %v750_v14 = vpop.f32.mrf.mxu0 }
 0x824   : > { %3580 = vmatmul.mubr.msk.f32.vlgmr.msra.gmra.mxu1 %vm347_vm5, %v750_v14 }
 0x825   : > { %v3576_v15 = vpop.f32.mrf.mxu0  ;;  %3589 = vmatprep.mubr.msk.f32.mxu1 %vm4047_vm2, %v4046_v18 }
 0x827   : > { %v902_v16 = vpop.f32.mrf.mxu0 }
 0x828   : > { %v906_v17 = vmul.f32 0.35355338, %v902_v16 }
 0x829   : > { %v3586_v19 = vpop.f32.mrf.mxu0 }
 0x82a   : > { %v907_v20 = vsel %vm347_vm5, %v906_v17, -inf }
 0x82b   : > { %908 = vmax.xlane.f32.xlu0 %v907_v20 }
 0x841   : > { %918 = vrot.lane.b32.xlu0 %v4177_v38, %s4057_s29 }
 0x845   : > { %1068 = vrot.lane.b32.xlu0 %v4177_v38, %s4058_s30 }
 0x8b4   : > { %v909_v21 = vpop.xlane.xlu0 %908 }
 0x8b5   : > { %v910_v22 = vsub.f32 %v906_v17, %v909_v21 }
 0x8b7   : > { %v911_v23 = vmul.f32 1.442695, %v910_v22 }
 0x8b8   : > { %v919_v24 = vpop.permute.xlu0 %918 }
 0x8b9   : > { %3907 = vpow2.f32 %v911_v23  ;;  %3588 = vmatpush3.msra.mxu1 %v919_v24 }
 0x8ba   : > { %3597 = vmatprep.subr.mxu1 %v4046_v18 }
 0x8bc   : > { %v1069_v37 = vpop.permute.xlu0 %1068 }
 0x8c6   : > { %v3908_v25 = vpop.eup %3907 }
 0x8c7   : > { %v913_v26 = vsel %vm347_vm5, %v3908_v25, 0.0 }
 0x8c8   : > { %914 = vadd.xlane.f32.xlu1 %v913_v26  ;;  %v4287_v26 = vsub.s32 0, %v4156_v11 }
 0x8d9   : > { %1070 = vrot.lane.b32.xlu1 %v4177_v38, %s4059_s4 }
 0x8e4   : > { %v823_v29 = vpop.f32.mrf.mxu1 }
 0x8e5   : > { %v827_v30 = vadd.f32 %v823_v29, %v587_v28  ;;  %v4291_v28 = vld [vmem:[#allocation2 + $0xe0] sm:$0x7] }
 0x8e6   : > { %v3581_v31 = vpop.f32.mrf.mxu1 }
 0x951   : > { %v915_v32 = vpop.xlane.xlu1 %914 }
 0x952   : > { %3909 = vrcp.f32 %v915_v32 }
 0x955   : > { %v1071_v36 = vpop.permute.xlu1 %1070 }
 0x95f   : > { %v3910_v33 = vpop.eup %3909 }
 0x960   : > { %v917_v34 = vmul.f32 %v3910_v33, %v3908_v25  ;;  %v1331_v33 = vrot.slane %v4291_v28, %v4287_v26 }
 0x962   : > { %3590 = vmatmul.mubr.msk.f32.vlgmr.msra.gmra.mxu1 %vm347_vm5, %v917_v34 }
 0x963   : > { %3598 = vmatpush3.xpose.msk.msra.mxu1 %vm347_vm5, %v1071_v36  ;;  %3599 = vmatprep.mubr.msk.f32.mxu1 %vm4047_vm2, %v4046_v18 }
 0x964   : > { %3607 = vmatprep.subr.mxu1 %v4046_v18 }
 0x966   : > { %3600 = vmatmul.mubr.msk.f32.vlgmr.msra.gmra.mxu1 %vm347_vm5, %v1069_v37 }
 0x967   : > { %3609 = vmatprep.mubr.msk.f32.mxu1 %vm4047_vm2, %v4046_v18  ;;  %3608 = vmatpush3.msra.mxu1 %v342_v51  ;;  %v1614_v51 = vld [vmem:[#allocation2 + $0x180] sm:$0xff] }
 0x968   : > { %3645 = vmatprep.subr.mxu1 %v4046_v18 }
 0xa22   : > { %v990_v40 = vpop.f32.mrf.mxu1 }
 0xa23   : > { %3595 = vmatmul.mubr.msk.f32.vlgmr.msra.gmra.mxu0 %vm347_vm5, %v990_v40 }
 0xa24   : > { %v3591_v41 = vpop.f32.mrf.mxu1  ;;  %3604 = vmatprep.mubr.msk.f32.mxu0 %vm4047_vm2, %v4046_v18 }
 0xa26   : > { %v1142_v42 = vpop.f32.mrf.mxu1 }
 0xa27   : > { %v1146_v43 = vmul.f32 0.35355338, %v1142_v42 }
 0xa28   : > { %v3601_v44 = vpop.f32.mrf.mxu1 }
 0xa29   : > { %v1147_v45 = vsel %vm347_vm5, %v1146_v43, -inf }
 0xa2a   : > { %1148 = vmax.xlane.f32.xlu1 %v1147_v45 }
 0xab3   : > { %v1149_v46 = vpop.xlane.xlu1 %1148 }
 0xab4   : > { %v1150_v47 = vsub.f32 %v1146_v43, %v1149_v46  ;;  %v1520_v46 = vld [vmem:[#allocation2 + $0x100] sm:$0xff] }
 0xab6   : > { %v1151_v48 = vmul.f32 1.442695, %v1150_v47  ;;  %v1519_v47 = vld [vmem:[#allocation2 + $0xf8] sm:$0xff] }
 0xab8   : > { %3911 = vpow2.f32 %v1151_v48  ;;  %v1518_v48 = vld [vmem:[#allocation2 + $0xf0] sm:$0xff] }
 0xac5   : > { %v3912_v49 = vpop.eup %3911 }
 0xac6   : > { %v1153_v50 = vsel %vm347_vm5, %v3912_v49, 0.0 }
 0xac7   : > { %1154 = vadd.xlane.f32.xlu0 %v1153_v50  ;;  %v1615_v50 = vld [vmem:[#allocation2 + $0x188] sm:$0xff] }
 0xadd   : > { %1158 = vrot.lane.b32.xlu0 %v4177_v38, %s4060_s6  ;;  %v1336_v38 = vld [vmem:[#allocation2 + $0xa0] sm:$0xff] }
 0xae3   : > { %v1063_v52 = vpop.f32.mrf.mxu0 }
 0xae4   : > { %v1067_v53 = vadd.f32 %v1063_v52, %v827_v30  ;;  %v1326_v30 = vrot.slane %v4289_v27, %v4287_v26  ;;  %v1613_v52 = vld [vmem:[#allocation2 + $0x178] sm:$0xff] }
 0xae5   : > { %v3596_v54 = vpop.f32.mrf.mxu0 }
 0xae6   : > { %v1611_v54 = vld [vmem:[#allocation2 + $0x168] sm:$0xff] }
 0xb50   : > { %v1155_v55 = vpop.xlane.xlu0 %1154 }
 0xb51   : > { %3913 = vrcp.f32 %v1155_v55  ;;  %v1610_v55 = vld [vmem:[#allocation2 + $0x160] sm:$0xff] }
 0xb54   : > { %v1159_v56 = vpop.permute.xlu0 %1158 }
 0xb55   : > { %3603 = vmatpush3.msra.mxu0 %v1159_v56  ;;  %v1609_v56 = vld [vmem:[#allocation2 + $0x158] sm:$0xff] }
 0xb56   : > { %3612 = vmatprep.subr.mxu0 %v4046_v18 }
 0xb5e   : > { %v3914_v57 = vpop.eup %3913 }
 0xb5f   : > { %v1157_v58 = vmul.f32 %v3914_v57, %v3912_v49  ;;  %v1517_v49 = vld [vmem:[#allocation2 + $0xe8] sm:$0xff]  ;;  %v1608_v57 = vld [vmem:[#allocation2 + $0x150] sm:$0xff] }
 0xb61   : > { %3605 = vmatmul.mubr.msk.f32.vlgmr.msra.gmra.mxu0 %vm347_vm5, %v1157_v58  ;;  %v1607_v58 = vld [vmem:[#allocation2 + $0x148] sm:$0xff] }
 0xb62   : > { %3620 = vmatprep.mubr.msk.f32.mxu0 %vm4047_vm2, %v4046_v18  ;;  %3613 = vmatpush3.msra.mxu0 %v1336_v38  ;;  %v1606_v38 = vld [vmem:[#allocation2 + $0x140] sm:$0xff] }
 0xb63   : > { %3614 = vmatprep.subr.mxu0 %v4046_v18 }
 0xb64   : > { %3615 = vmatpush3.msra.mxu0 %v1335_v59  ;;  %v1605_v59 = vld [vmem:[#allocation2 + $0x138] sm:$0xff] }
 0xb65   : > { %3616 = vmatprep.subr.mxu0 %v4046_v18 }
 0xb66   : > { %3617 = vmatpush3.msra.mxu0 %v1334_v60  ;;  %v1604_v60 = vld [vmem:[#allocation2 + $0x130] sm:$0xff] }
 0xb67   : > { %3618 = vmatprep.subr.mxu0 %v4046_v18 }
 0xb68   : > { %3619 = vmatpush3.msra.mxu0 %v1333_v61  ;;  %v1603_v61 = vld [vmem:[#allocation2 + $0x128] sm:$0xff] }
 0xb69   : > { %3621 = vmatmul.mubr.msk.f32.vlgmr.msra.gmra.mxu0 %vm265_vm4, %v4265_v62  ;;  %3623 = vmatprep.subr.mxu0 %v4046_v18 }
 0xb6a   : > { %3631 = vmatprep.mubr.msk.f32.mxu0 %vm4047_vm2, %v4046_v18  ;;  %3624 = vmatpush3.msra.mxu0 %v1414_v1 }
 0xb6b   : > { %3625 = vmatprep.subr.mxu0 %v4046_v18 }
 0xb6c   : > { %3626 = vmatpush3.msra.mxu0 %v1413_v2  ;;  %v4322_v2 = vsub.s32 1, %v4156_v11 }
 0xb6d   : > { %3627 = vmatprep.subr.mxu0 %v4046_v18 }
 0xb6e   : > { %3628 = vmatpush3.msra.mxu0 %v1412_v4 }
 0xb6f   : > { %3629 = vmatprep.subr.mxu0 %v4046_v18 }
 0xb70   : > { %3630 = vmatpush3.msra.mxu0 %v1411_v7 }
 0xb71   : > { %3634 = vmatprep.subr.mxu0 %v4046_v18 }
 0xc21   : > { %v1230_v63 = vpop.f32.mrf.mxu0 }
 0xc22   : > { %3610 = vmatmul.mubr.msk.f32.vlgmr.msra.gmra.mxu1 %vm347_vm5, %v1230_v63 }
 0xc23   : > { %v3606_v0 = vpop.f32.mrf.mxu0  ;;  %3677 = vmatprep.mubr.msk.f32.mxu1 %vm4047_vm2, %v4046_v18  ;;  %3646 = vmatpush3.msra.mxu1 %v1615_v50 }
 0xc24   : > { %3647 = vmatprep.subr.mxu1 %v4046_v18 }
 0xc25   : > { %3648 = vmatpush3.msra.mxu1 %v1614_v51 }
 0xc26   : > { %3649 = vmatprep.subr.mxu1 %v4046_v18 }
 0xc27   : > { %3650 = vmatpush3.msra.mxu1 %v1613_v52 }
 0xc28   : > { %3651 = vmatprep.subr.mxu1 %v4046_v18 }
 0xc29   : > { %v1407_v5 = vpop.f32.mrf.mxu0 }
 0xc2a   : > { %v1408_v6 = vadd.f32 %v1407_v5, %v1337_v3  ;;  %v1510_v3 = vrot.slane %v4289_v27, %v4322_v2  ;;  %v1515_v5 = vrot.slane %v4291_v28, %v4322_v2 }
 0xc2b   : > { %v3622_v8 = vpop.f32.mrf.mxu0 }
 0xc2c   : > { %3632 = vmatmul.mubr.msk.f32.vlgmr.msra.gmra.mxu0 %vm265_vm4, %v1408_v6 }
 0xc2d   : > { %3642 = vmatprep.mubr.msk.f32.mxu0 %vm4047_vm2, %v4046_v18  ;;  %3635 = vmatpush3.msra.mxu0 %v1520_v46 }
 0xc2e   : > { %3636 = vmatprep.subr.mxu0 %v4046_v18 }
 0xc2f   : > { %3637 = vmatpush3.msra.mxu0 %v1519_v47 }
 0xc30   : > { %3638 = vmatprep.subr.mxu0 %v4046_v18 }
 0xc31   : > { %3639 = vmatpush3.msra.mxu0 %v1518_v48  ;;  %v3387_v48 = vld [vmem:[#allocation2 + $0x1b8] ss:$0 sm:$0xff] }
 0xc32   : > { %3640 = vmatprep.subr.mxu0 %v4046_v18 }
 0xc33   : > { %3641 = vmatpush3.msra.mxu0 %v1517_v49 }
 0xc34   : > { %3680 = vmatprep.subr.mxu0 %v4046_v18 }
 0xce2   : > { %v1303_v9 = vpop.f32.mrf.mxu1 }
 0xce3   : > { %v1307_v10 = vadd.f32 %v1303_v9, %v1067_v53  ;;  %v1612_v53 = vld [vmem:[#allocation2 + $0x170] sm:$0xff]  ;;  %v1602_v9 = vld [vmem:[#allocation2 + $0x120] sm:$0xff] }
 0xce4   : > { %v3611_v12 = vpop.f32.mrf.mxu1  ;;  %3652 = vmatpush3.msra.mxu1 %v1612_v53 }
 0xce5   : > { %v1308_v13 = vadd.f32 %v1307_v10, %v4171_v35  ;;  %v1415_v35 = vld [vmem:[#allocation2 + $0xd0] sm:$0x1]  ;;  %3653 = vmatprep.subr.mxu1 %v4046_v18  ;;  %v1601_v10 = vld [vmem:[#allocation2 + $0x118] sm:$0xff] }
 0xce6   : > { %3654 = vmatpush3.msra.mxu1 %v1611_v54  ;;  %v1600_v12 = vld [vmem:[#allocation2 + $0x110] sm:$0xff] }
 0xce7   : > { %v1309_v14 = vsel %vm265_vm4, %v1308_v13, 0.0  ;;  %3655 = vmatprep.subr.mxu1 %v4046_v18 }
 0xce8   : > { %1310 = vadd.xlane.f32.xlu1 %v1309_v14  ;;  %3656 = vmatpush3.msra.mxu1 %v1610_v55 }
 0xce9   : > { %3657 = vmatprep.subr.mxu1 %v4046_v18 }
 0xcea   : > { %3658 = vmatpush3.msra.mxu1 %v1609_v56 }
 0xceb   : > { %3659 = vmatprep.subr.mxu1 %v4046_v18 }
 0xcec   : > { %v1485_v21 = vpop.f32.mrf.mxu0  ;;  %3660 = vmatpush3.msra.mxu1 %v1608_v57 }
 0xced   : > { %v1486_v29 = vadd.f32 %v1485_v21, %v1415_v35  ;;  %3661 = vmatprep.subr.mxu1 %v4046_v18 }
 0xcee   : > { %v3633_v22 = vpop.f32.mrf.mxu0  ;;  %3662 = vmatpush3.msra.mxu1 %v1607_v58 }
 0xcef   : > { %v1492_v34 = vrot.slane %v1486_v29, %v4287_v26  ;;  %3663 = vmatprep.subr.mxu1 %v4046_v18 }
 0xcf0   : > { %3664 = vmatpush3.msra.mxu1 %v1606_v38 }
 0xcf1   : > { %3665 = vmatprep.subr.mxu1 %v4046_v18 }
 0xcf2   : > { %3666 = vmatpush3.msra.mxu1 %v1605_v59 }
 0xcf3   : > { %3667 = vmatprep.subr.mxu1 %v4046_v18 }
 0xcf4   : > { %3668 = vmatpush3.msra.mxu1 %v1604_v60 }
 0xcf5   : > { %3669 = vmatprep.subr.mxu1 %v4046_v18 }
 0xcf6   : > { %3670 = vmatpush3.msra.mxu1 %v1603_v61 }
 0xcf7   : > { %3671 = vmatprep.subr.mxu1 %v4046_v18 }
 0xcf8   : > { %3672 = vmatpush3.msra.mxu1 %v1602_v9 }
 0xcf9   : > { %3673 = vmatprep.subr.mxu1 %v4046_v18 }
 0xcfa   : > { %3674 = vmatpush3.msra.mxu1 %v1601_v10 }
 0xcfb   : > { %3675 = vmatprep.subr.mxu1 %v4046_v18 }
 0xcfc   : > { %3676 = vmatpush3.msra.mxu1 %v1600_v12 }
 0xcfd   : > { %3716 = vmatprep.subr.mxu1 %v4046_v18 }
 0xd71   : > { %v1311_v15 = vpop.xlane.xlu1 %1310 }
 0xd72   : > { %v1313_v16 = vmul.f32 0.03125, %v1311_v15 }
 0xd74   : > { %v1314_v17 = vsub.f32 %v1308_v13, %v1313_v16  ;;  %v3384_v13 = vld [vmem:[#allocation2 + $0x108] ss:$0 sm:$0xff] }
 0xd76   : > { %v1315_v19 = vmul.f32 %v1314_v17, %v1314_v17 }
 0xd78   : > { %v1316_v20 = vsel %vm265_vm4, %v1315_v19, 0.0  ;;  %v3386_v19 = vld [vmem:[#allocation2 + $0x190] ss:$0 sm:$0xff] }
 0xd79   : > { %1317 = vadd.xlane.f32.xlu1 %v1316_v20 }
 0xe02   : > { %v1318_v23 = vpop.xlane.xlu1 %1317 }
 0xe03   : > { %v1319_v24 = vmul.f32 0.03125, %v1318_v23 }
 0xe05   : > { %v1320_v25 = vadd.f32 1e-05, %v1319_v24 }
 0xe07   : > { %3915 = vrsqrt.f32 %v1320_v25 }
 0xe14   : > { %v3916_v31 = vpop.eup %3915 }
 0xe15   : > { %v1322_v32 = vmul.f32 %v3916_v31, %v1314_v17 }
 0xe17   : > { %v1327_v36 = vmul.f32 %v1326_v30, %v1322_v32  ;;  %v1720_v32 = vld [vmem:[#allocation2 + $0x1b0] sm:$0xff] }
 0xe19   : > { %v1332_v37 = vadd.f32 %v1331_v33, %v1327_v36  ;;  %v1719_v33 = vld [vmem:[#allocation2 + $0x1a8] sm:$0xff]  ;;  %v1717_v36 = vld [vmem:[#allocation2 + $0x198] sm:$0xff] }
 0xe1b   : > { %v1493_v39 = vadd.f32 %v1492_v34, %v1332_v37  ;;  %v1718_v34 = vld [vmem:[#allocation2 + $0x1a0] sm:$0xff] }
 0xe1d   : > { %v1494_v40 = vsel %vm265_vm4, %v1493_v39, 0.0 }
 0xe1e   : > { %1495 = vadd.xlane.f32.xlu1 %v1494_v40 }
 0xea7   : > { %v1496_v41 = vpop.xlane.xlu1 %1495 }
 0xea8   : > { %v1497_v42 = vmul.f32 0.03125, %v1496_v41  ;;  %v4344_v41 = vsub.s32 2, %v4156_v11 }
 0xeaa   : > { %v4299_v43 = vsub.f32 %v1493_v39, %v1497_v42  ;;  %v1708_v42 = vrot.slane %v4289_v27, %v4344_v41 }
 0xeac   : > { %v1499_v44 = vmul.f32 %v4299_v43, %v4299_v43 }
 0xeae   : > { %v1500_v45 = vsel %vm265_vm4, %v1499_v44, 0.0  ;;  %v1713_v44 = vrot.slane %v4291_v28, %v4344_v41 }
 0xeaf   : > { %1501 = vadd.xlane.f32.xlu1 %v1500_v45 }
 0xf38   : > { %v1502_v63 = vpop.xlane.xlu1 %1501 }
 0xf39   : > { %v1503_v0 = vmul.f32 0.03125, %v1502_v63  ;;  %v1799_v63 = vld [vmem:[#allocation2 + $0x1c0] sm:$0xff] }
 0xf3b   : > { %v1504_v1 = vadd.f32 1e-05, %v1503_v0 }
 0xf3d   : > { %3917 = vrsqrt.f32 %v1504_v1 }
 0xf4a   : > { %v3918_v4 = vpop.eup %3917 }
 0xf4b   : > { %v1506_v6 = vmul.f32 %v3918_v4, %v4299_v43 }
 0xf4d   : > { %v1511_v7 = vmul.f32 %v1510_v3, %v1506_v6 }
 0xf4f   : > { %v1516_v8 = vadd.f32 %v1515_v5, %v1511_v7 }
 0xf51   : > { %3643 = vmatmul.mubr.msk.f32.vlgmr.msra.gmra.mxu0 %vm265_vm4, %v1516_v8 }
 0xf52   : > { %3688 = vmatprep.mubr.msk.f32.mxu0 %vm4047_vm2, %v4046_v18  ;;  %3681 = vmatpush3.msra.mxu0 %v1720_v32 }
 0xf53   : > { %3682 = vmatprep.subr.mxu0 %v4046_v18 }
 0xf54   : > { %3683 = vmatpush3.msra.mxu0 %v1719_v33 }
 0xf55   : > { %3684 = vmatprep.subr.mxu0 %v4046_v18 }
 0xf56   : > { %3685 = vmatpush3.msra.mxu0 %v1718_v34 }
 0xf57   : > { %3686 = vmatprep.subr.mxu0 %v4046_v18 }
 0xf58   : > { %3687 = vmatpush3.msra.mxu0 %v1717_v36 }
 0xf59   : > { %3691 = vmatprep.subr.mxu0 %v4046_v18 }
0x1011   : > { %v1595_v14 = vpop.f32.mrf.mxu0 }
0x1012   : > { %v1596_v15 = vadd.f32 %v3384_v13, %v1595_v14 }
0x1013   : > { %v3644_v16 = vpop.f32.mrf.mxu0 }
0x1014   : > { %v1599_v17 = vmax.f32 %v1596_v15, 0.0 }
0x1016   : > { %3678 = vmatmul.mubr.f32.vlgmr.msra.gmra.mxu1 %v1599_v17 }
0x1017   : > { %3718 = vmatprep.mubr.msk.f32.mxu1 %vm4047_vm2, %v4046_v18 }
0x10d6   : > { %v1687_v20 = vpop.f32.mrf.mxu1 }
0x10d7   : > { %v1688_v21 = vadd.f32 %v3386_v19, %v1687_v20 }
0x10d8   : > { %v3679_v22 = vpop.f32.mrf.mxu1 }
0x10d9   : > { %v1691_v23 = vadd.f32 %v1688_v21, %v1516_v8 }
0x10db   : > { %v1692_v24 = vsel %vm265_vm4, %v1691_v23, 0.0 }
0x10dc   : > { %1693 = vadd.xlane.f32.xlu1 %v1692_v24  ;;  %v1800_v24 = vld [vmem:[#allocation2 + $0x1c8] sm:$0xff] }
0x10dd   : > { %3717 = vmatpush3.msra.mxu1 %v1800_v24 }
0x10de   : > { %3726 = vmatprep.subr.mxu1 %v4046_v18 }
0x1165   : > { %v1694_v25 = vpop.xlane.xlu1 %1693 }
0x1166   : > { %v1695_v35 = vmul.f32 0.03125, %v1694_v25 }
0x1168   : > { %v1696_v29 = vsub.f32 %v1691_v23, %v1695_v35 }
0x116a   : > { %v1697_v30 = vmul.f32 %v1696_v29, %v1696_v29 }
0x116c   : > { %v1698_v31 = vsel %vm265_vm4, %v1697_v30, 0.0 }
0x116d   : > { %1699 = vadd.xlane.f32.xlu1 %v1698_v31 }
0x11f6   : > { %v1700_v37 = vpop.xlane.xlu1 %1699 }
0x11f7   : > { %v1701_v39 = vmul.f32 0.03125, %v1700_v37 }
0x11f9   : > { %v1702_v40 = vadd.f32 1e-05, %v1701_v39 }
0x11fb   : > { %3919 = vrsqrt.f32 %v1702_v40 }
0x1208   : > { %v3920_v43 = vpop.eup %3919 }
0x1209   : > { %v1704_v45 = vmul.f32 %v3920_v43, %v1696_v29 }
0x120b   : > { %v1709_v46 = vmul.f32 %v1708_v42, %v1704_v45  ;;  %v3393_v42 = vld [vmem:[#allocation2 + $0x1e0] ss:$0 sm:$0xff] }
0x120d   : > { %v4350_v47 = vadd.f32 %v1713_v44, %v1709_v46 }
0x120f   : > { %3689 = vmatmul.mubr.msk.f32.vlgmr.msra.gmra.mxu0 %vm265_vm4, %v4350_v47 }
0x1210   : > { %3693 = vmatprep.mubr.msk.f32.mxu0 %vm4047_vm2, %v4046_v18 }
0x12cf   : > { %v1795_v11 = vpop.f32.mrf.mxu0 }
0x12d0   : > { %v4356_v49 = vadd.f32 %v3387_v48, %v1795_v11 }
0x12d1   : > { %v3690_v50 = vpop.f32.mrf.mxu0 }
0x12d2   : > { %1805 = vrot.lane.b32.xlu0 %v4356_v49, %s4050_s19 }
0x1344   : > { %v1806_v27 = vpop.permute.xlu0 %1805 }
0x1345   : > { %3692 = vmatpush3.xpose.msk.msra.mxu0 %vm347_vm5, %v1806_v27 }
0x1346   : > { %3696 = vmatprep.subr.mxu0 %v4046_v18 }
0x1348   : > { %3694 = vmatmul.mubr.msk.f32.vlgmr.msra.gmra.mxu0 %vm347_vm5, %v4356_v49 }
0x1349   : > { %3698 = vmatprep.mubr.msk.f32.mxu0 %vm4047_vm2, %v4046_v18 }
0x1408   : > { %v1877_v28 = vpop.f32.mrf.mxu0 }
0x1409   : > { %v1881_v51 = vmul.f32 0.35355338, %v1877_v28 }
0x140a   : > { %v3695_v52 = vpop.f32.mrf.mxu0 }
0x140b   : > { %v1882_v53 = vsel %vm347_vm5, %v1881_v51, -inf }
0x140c   : > { %1883 = vmax.xlane.f32.xlu1 %v1882_v53 }
0x141d   : > { %1893 = vrot.lane.b32.xlu1 %v4356_v49, %s4051_s20 }
0x1421   : > { %2049 = vrot.lane.b32.xlu1 %v4356_v49, %s4053_s25  ;;  %s3264_s25 = scalar_lea.sflag [#allocation4], %s185_s5 }
0x1425   : > { %2047 = vrot.lane.b32.xlu1 %v4356_v49, %s4052_s24  ;;  %s4509_s24 = scalar_lea.hbm %s4547_s3, %s3414_s10 }
0x1495   : > { %v1884_v54 = vpop.xlane.xlu1 %1883 }
0x1496   : > { %v1885_v55 = vsub.f32 %v1881_v51, %v1884_v54  ;;  %v1801_v51 = vld [vmem:[#allocation2 + $0x1d0] sm:$0xff] }
0x1498   : > { %v1886_v56 = vmul.f32 1.442695, %v1885_v55 }
0x1499   : > { %v1894_v57 = vpop.permute.xlu1 %1893 }
0x149a   : > { %3921 = vpow2.f32 %v1886_v56  ;;  %3697 = vmatpush3.msra.mxu0 %v1894_v57 }
0x149b   : > { %3701 = vmatprep.subr.mxu0 %v4046_v18 }
0x149d   : > { %v2050_v0 = vpop.permute.xlu1 %2049 }
0x14a1   : > { %v2048_v4 = vpop.permute.xlu1 %2047 }
0x14a7   : > { %v3922_v58 = vpop.eup %3921 }
0x14a8   : > { %v1888_v38 = vsel %vm347_vm5, %v3922_v58, 0.0 }
0x14a9   : > { %1889 = vadd.xlane.f32.xlu0 %v1888_v38 }
0x14bf   : > { %2137 = vrot.lane.b32.xlu0 %v4356_v49, %s4056_s28 }
0x1532   : > { %v1890_v59 = vpop.xlane.xlu0 %1889 }
0x1533   : > { %3923 = vrcp.f32 %v1890_v59 }
0x1536   : > { %v2138_v5 = vpop.permute.xlu0 %2137 }
0x1540   : > { %v3924_v60 = vpop.eup %3923 }
0x1541   : > { %v1892_v61 = vmul.f32 %v3924_v60, %v3922_v58 }
0x1543   : > { %3699 = vmatmul.mubr.msk.f32.vlgmr.msra.gmra.mxu0 %vm347_vm5, %v1892_v61 }
0x1544   : > { %3702 = vmatpush3.msra.mxu0 %v1799_v63  ;;  %3703 = vmatprep.mubr.msk.f32.mxu0 %vm4047_vm2, %v4046_v18  ;;  %v1802_v63 = vld [vmem:[#allocation2 + $0x1d8] sm:$0xff] }
0x1545   : > { %3706 = vmatprep.subr.mxu0 %v4046_v18 }
0x1603   : > { %v1965_v1 = vpop.f32.mrf.mxu0 }
0x1604   : > { %3704 = vmatmul.mubr.msk.f32.vlgmr.msra.gmra.mxu0 %vm347_vm5, %v1965_v1 }
0x1605   : > { %3707 = vmatpush3.xpose.msk.msra.mxu0 %vm347_vm5, %v2050_v0  ;;  %v3700_v3 = vpop.f32.mrf.mxu0  ;;  %3708 = vmatprep.mubr.msk.f32.mxu0 %vm4047_vm2, %v4046_v18 }
0x1606   : > { %3711 = vmatprep.subr.mxu0 %v4046_v18 }
0x1608   : > { %3709 = vmatmul.mubr.msk.f32.vlgmr.msra.gmra.mxu0 %vm347_vm5, %v2048_v4 }
0x1609   : > { %3712 = vmatpush3.msra.mxu0 %v2138_v5  ;;  %3713 = vmatprep.mubr.msk.f32.mxu0 %vm4047_vm2, %v4046_v18 }
0x160a   : > { %3721 = vmatprep.subr.mxu0 %v4046_v18 }
0x16c4   : > { %v2038_v6 = vpop.f32.mrf.mxu0 }
0x16c5   : > { %v2046_v43 = vadd.f32 %v3393_v42, %v2038_v6  ;;  %v2870_v42 = vld [vmem:[#allocation2 + $0x230] sm:$0x1] }
0x16c6   : > { %v3705_v7 = vpop.f32.mrf.mxu0 }
0x16c8   : > { %v2121_v8 = vpop.f32.mrf.mxu0 }
0x16c9   : > { %v2125_v9 = vmul.f32 0.35355338, %v2121_v8  ;;  %v2793_v8 = vld [vmem:[#allocation2 + $0x1f8] sm:$0xff] }
0x16ca   : > { %v3710_v10 = vpop.f32.mrf.mxu0 }
0x16cb   : > { %v2126_v12 = vsel %vm347_vm5, %v2125_v9, -inf  ;;  %v2791_v10 = vld [vmem:[#allocation2 + $0x1e8] sm:$0xff] }
0x16cc   : > { %2127 = vmax.xlane.f32.xlu1 %v2126_v12 }
0x1755   : > { %v2128_v13 = vpop.xlane.xlu1 %2127 }
0x1756   : > { %v2129_v14 = vsub.f32 %v2125_v9, %v2128_v13  ;;  %v2792_v9 = vld [vmem:[#allocation2 + $0x1f0] sm:$0xff] }
0x1758   : > { %v2130_v15 = vmul.f32 1.442695, %v2129_v14  ;;  %v2869_v14 = vld [vmem:[#allocation2 + $0x228] sm:$0xff] }
0x175a   : > { %3925 = vpow2.f32 %v2130_v15  ;;  %v2868_v15 = vld [vmem:[#allocation2 + $0x220] sm:$0xff] }
0x1767   : > { %v3926_v16 = vpop.eup %3925 }
0x1768   : > { %v2132_v17 = vsel %vm347_vm5, %v3926_v16, 0.0 }
0x1769   : > { %2133 = vadd.xlane.f32.xlu0 %v2132_v17  ;;  %v2867_v17 = vld [vmem:[#allocation2 + $0x218] sm:$0xff] }
0x177f   : > { %2289 = vrot.lane.b32.xlu0 %v4356_v49, %s4054_s26  ;;  %s3975_s26 = scalar_lea.vmem %s3277_s17, 16 }
0x1780   : > { %p3976_p6 = scmp.ne.s32.totalorder %s3277_s17, %s3975_s26 }
0x1782   : > { %p3977_p9 = pnand %p3976_p6, %p4120_p5 }
0x1783   : > { %2287 = vrot.lane.b32.xlu0 %v4356_v49, %s4055_s27  ;;  %s4061_s27 = smov [#allocation5]  }
0x1784   : > { %p3978_p10 = pneg %p3977_p9  ;;  %s3979_s28 = sshll.u32 %s4061_s27, 4  ;;  %s3980_s28 = int_to_ptr.vmem [resolvable:$false] %s3979_s28 }
0x1785   : > { %s3981_s16 = scalar_lea.vmem %s3980_s28, 32  ;;  %p3982_p11 = scmp.lt.s32.totalorder %s3277_s17, %s3980_s28 }
0x1786   : > { %p3983_p12 = scmp.lt.s32.totalorder %s3981_s16, %s3975_s26 }
0x1788   : > { %p3984_p13 = por %p3983_p12, %p3982_p11 }
0x178a   : > { %p3985_p0 = pnand %p3984_p13, %p3978_p10 }
0x17f2   : > { %v2134_v19 = vpop.xlane.xlu0 %2133 }
0x17f3   : > { %3927 = vrcp.f32 %v2134_v19 }
0x17f6   : > { %v2290_v21 = vpop.permute.xlu0 %2289 }
0x17fa   : > { %v2288_v23 = vpop.permute.xlu0 %2287 }
0x1800   : > { %v3928_v20 = vpop.eup %3927 }
0x1801   : > { %v2136_v22 = vmul.f32 %v3928_v20, %v3926_v16  ;;  %v2795_v16 = vld [vmem:[#allocation2 + $0x208] sm:$0x1]  ;;  %v2866_v20 = vld [vmem:[#allocation2 + $0x210] sm:$0xff] }
0x1803   : > { %3714 = vmatmul.mubr.msk.f32.vlgmr.msra.gmra.mxu0 %vm347_vm5, %v2136_v22 }
0x1804   : > { %3722 = vmatpush3.xpose.msk.msra.mxu0 %vm347_vm5, %v2290_v21  ;;  %3723 = vmatprep.mubr.msk.f32.mxu0 %vm4047_vm2, %v4046_v18 }
0x1805   : > { %3731 = vmatprep.subr.mxu0 %v4046_v18 }
0x1807   : > { %3724 = vmatmul.mubr.msk.f32.vlgmr.msra.gmra.mxu0 %vm347_vm5, %v2288_v23 }
0x1808   : > { %3733 = vmatprep.mubr.msk.f32.mxu0 %vm4047_vm2, %v4046_v18  ;;  %3732 = vmatpush3.msra.mxu0 %v1801_v51 }
0x1809   : > { %3741 = vmatprep.subr.mxu0 %v4046_v18 }
0x18c3   : > { %v2209_v25 = vpop.f32.mrf.mxu0 }
0x18c4   : > { %3719 = vmatmul.mubr.msk.f32.vlgmr.msra.gmra.mxu1 %vm347_vm5, %v2209_v25 }
0x18c5   : > { %v3715_v35 = vpop.f32.mrf.mxu0  ;;  %3728 = vmatprep.mubr.msk.f32.mxu1 %vm4047_vm2, %v4046_v18 }
0x18c7   : > { %v2361_v29 = vpop.f32.mrf.mxu0 }
0x18c8   : > { %v2365_v30 = vmul.f32 0.35355338, %v2361_v29 }
0x18c9   : > { %v3725_v31 = vpop.f32.mrf.mxu0 }
0x18ca   : > { %v2366_v32 = vsel %vm347_vm5, %v2365_v30, -inf }
0x18cb   : > { %2367 = vmax.xlane.f32.xlu1 %v2366_v32 }
0x18dc   : > { %2377 = vrot.lane.b32.xlu1 %v4356_v49, %s4057_s29 }
0x18e0   : > { %2529 = vrot.lane.b32.xlu1 %v4356_v49, %s4059_s4 }
0x18e4   : > { %2527 = vrot.lane.b32.xlu1 %v4356_v49, %s4058_s30 }
0x1954   : > { %v2368_v33 = vpop.xlane.xlu1 %2367 }
0x1955   : > { %v2369_v34 = vsub.f32 %v2365_v30, %v2368_v33 }
0x1957   : > { %v2370_v36 = vmul.f32 1.442695, %v2369_v34 }
0x1958   : > { %v2378_v37 = vpop.permute.xlu1 %2377 }
0x1959   : > { %3929 = vpow2.f32 %v2370_v36  ;;  %3727 = vmatpush3.msra.mxu1 %v2378_v37 }
0x195a   : > { %3736 = vmatprep.subr.mxu1 %v4046_v18 }
0x195c   : > { %v2530_v50 = vpop.permute.xlu1 %2529 }
0x1960   : > { %v2528_v28 = vpop.permute.xlu1 %2527 }
0x1966   : > { %v3930_v39 = vpop.eup %3929 }
0x1967   : > { %v2372_v40 = vsel %vm347_vm5, %v3930_v39, 0.0 }
0x1968   : > { %2373 = vadd.xlane.f32.xlu0 %v2372_v40 }
0x1984   : > { %v2282_v44 = vpop.f32.mrf.mxu1 }
0x1985   : > { %v2286_v45 = vadd.f32 %v2282_v44, %v2046_v43  ;;  %v4459_v43 = vld [vmem:[#allocation2 + $0x238] sm:$0x7] }
0x1986   : > { %v3720_v46 = vpop.f32.mrf.mxu1 }
0x19f1   : > { %v2374_v48 = vpop.xlane.xlu0 %2373 }
0x19f2   : > { %3931 = vrcp.f32 %v2374_v48 }
0x19ff   : > { %v3932_v11 = vpop.eup %3931 }
0x1a00   : > { %v2376_v27 = vmul.f32 %v3932_v11, %v3930_v39 }
0x1a02   : > { %3729 = vmatmul.mubr.msk.f32.vlgmr.msra.gmra.mxu1 %vm347_vm5, %v2376_v27 }
0x1a03   : > { %3737 = vmatpush3.xpose.msk.msra.mxu1 %vm347_vm5, %v2530_v50  ;;  %3738 = vmatprep.mubr.msk.f32.mxu1 %vm4047_vm2, %v4046_v18 }
0x1a04   : > { %3746 = vmatprep.subr.mxu1 %v4046_v18 }
0x1a06   : > { %3739 = vmatmul.mubr.msk.f32.vlgmr.msra.gmra.mxu1 %vm347_vm5, %v2528_v28 }
0x1a07   : > { %3748 = vmatprep.mubr.msk.f32.mxu1 %vm4047_vm2, %v4046_v18  ;;  %3747 = vmatpush3.msra.mxu1 %v1802_v63  ;;  %v3068_v63 = vld [vmem:[#allocation2 + $0x2d8] sm:$0xff] }
0x1a08   : > { %3762 = vmatprep.subr.mxu1 %v4046_v18 }
0x1ac2   : > { %v2449_v52 = vpop.f32.mrf.mxu1 }
0x1ac3   : > { %3734 = vmatmul.mubr.msk.f32.vlgmr.msra.gmra.mxu0 %vm347_vm5, %v2449_v52 }
0x1ac4   : > { %v3730_v53 = vpop.f32.mrf.mxu1  ;;  %3743 = vmatprep.mubr.msk.f32.mxu0 %vm4047_vm2, %v4046_v18 }
0x1ac6   : > { %v2601_v54 = vpop.f32.mrf.mxu1 }
0x1ac7   : > { %v2605_v55 = vmul.f32 0.35355338, %v2601_v54 }
0x1ac8   : > { %v3740_v56 = vpop.f32.mrf.mxu1 }
0x1ac9   : > { %v2606_v57 = vsel %vm347_vm5, %v2605_v55, -inf }
0x1aca   : > { %2607 = vmax.xlane.f32.xlu1 %v2606_v57 }
0x1b53   : > { %v2608_v58 = vpop.xlane.xlu1 %2607 }
0x1b54   : > { %v2609_v38 = vsub.f32 %v2605_v55, %v2608_v58  ;;  %v2975_v58 = vld [vmem:[#allocation2 + $0x260] sm:$0xff] }
0x1b56   : > { %v2610_v59 = vmul.f32 1.442695, %v2609_v38  ;;  %v2974_v38 = vld [vmem:[#allocation2 + $0x258] sm:$0xff] }
0x1b58   : > { %3933 = vpow2.f32 %v2610_v59  ;;  %v2973_v59 = vld [vmem:[#allocation2 + $0x250] sm:$0xff] }
0x1b65   : > { %v3934_v60 = vpop.eup %3933 }
0x1b66   : > { %v2612_v61 = vsel %vm347_vm5, %v3934_v60, 0.0 }
0x1b67   : > { %2613 = vadd.xlane.f32.xlu0 %v2612_v61  ;;  %v3069_v61 = vld [vmem:[#allocation2 + $0x2e0] sm:$0xff] }
0x1b7d   : > { %2617 = vrot.lane.b32.xlu0 %v4356_v49, %s4060_s6  ;;  %v2794_v49 = vld [vmem:[#allocation2 + $0x200] sm:$0xff] }
0x1b83   : > { %v2522_v0 = vpop.f32.mrf.mxu0 }
0x1b84   : > { %v2526_v1 = vadd.f32 %v2522_v0, %v2286_v45  ;;  %v2784_v45 = vrot.slane %v4459_v43, %v4287_v26  ;;  %v3067_v0 = vld [vmem:[#allocation2 + $0x2d0] sm:$0xff] }
0x1b85   : > { %v3735_v3 = vpop.f32.mrf.mxu0 }
0x1b86   : > { %v3065_v3 = vld [vmem:[#allocation2 + $0x2c0] sm:$0xff] }
0x1bf0   : > { %v2614_v4 = vpop.xlane.xlu0 %2613 }
0x1bf1   : > { %3935 = vrcp.f32 %v2614_v4  ;;  %v3064_v4 = vld [vmem:[#allocation2 + $0x2b8] sm:$0xff] }
0x1bf4   : > { %v2618_v5 = vpop.permute.xlu0 %2617 }
0x1bf5   : > { %3742 = vmatpush3.msra.mxu0 %v2618_v5  ;;  %v3063_v5 = vld [vmem:[#allocation2 + $0x2b0] sm:$0xff] }
0x1bf6   : > { %3751 = vmatprep.subr.mxu0 %v4046_v18 }
0x1bfe   : > { %v3936_v6 = vpop.eup %3935 }
0x1bff   : > { %v2616_v7 = vmul.f32 %v3936_v6, %v3934_v60  ;;  %v3070_v60 = vld [vmem:[#allocation2 + $0x2e8] sm:$0xff] }
0x1c00   : > { %v3062_v6 = vld [vmem:[#allocation2 + $0x2a8] sm:$0xff] }
0x1c01   : > { %3744 = vmatmul.mubr.msk.f32.vlgmr.msra.gmra.mxu0 %vm347_vm5, %v2616_v7  ;;  %v3061_v7 = vld [vmem:[#allocation2 + $0x2a0] sm:$0xff] }
0x1c02   : > { %3759 = vmatprep.mubr.msk.f32.mxu0 %vm4047_vm2, %v4046_v18  ;;  %3752 = vmatpush3.msra.mxu0 %v2794_v49  ;;  %v3060_v49 = vld [vmem:[#allocation2 + $0x298] sm:$0xff] }
0x1c03   : > { %3753 = vmatprep.subr.mxu0 %v4046_v18 }
0x1c04   : > { %3754 = vmatpush3.msra.mxu0 %v2793_v8  ;;  %v3059_v8 = vld [vmem:[#allocation2 + $0x290] sm:$0xff] }
0x1c05   : > { %3755 = vmatprep.subr.mxu0 %v4046_v18 }
0x1c06   : > { %3756 = vmatpush3.msra.mxu0 %v2792_v9  ;;  %v3058_v9 = vld [vmem:[#allocation2 + $0x288] sm:$0xff] }
0x1c07   : > { %3757 = vmatprep.subr.mxu0 %v4046_v18 }
0x1c08   : > { %3758 = vmatpush3.msra.mxu0 %v2791_v10 }
0x1c09   : > { %3760 = vmatmul.mubr.msk.f32.vlgmr.msra.gmra.mxu0 %vm265_vm4, %v4265_v62  ;;  %3773 = vmatprep.subr.mxu0 %v4046_v18 }
0x1c0a   : > { %3781 = vmatprep.mubr.msk.f32.mxu0 %vm4047_vm2, %v4046_v18  ;;  %3774 = vmatpush3.msra.mxu0 %v2975_v58 }
0x1c0b   : > { %3775 = vmatprep.subr.mxu0 %v4046_v18 }
0x1c0c   : > { %3776 = vmatpush3.msra.mxu0 %v2974_v38 }
0x1c0d   : > { %3777 = vmatprep.subr.mxu0 %v4046_v18 }
0x1c0e   : > { %3778 = vmatpush3.msra.mxu0 %v2973_v59 }
0x1c0f   : > { %3779 = vmatprep.subr.mxu0 %v4046_v18 }
0x1cc1   : > { %v2689_v12 = vpop.f32.mrf.mxu0 }
0x1cc2   : > { %3749 = vmatmul.mubr.msk.f32.vlgmr.msra.gmra.mxu1 %vm347_vm5, %v2689_v12 }
0x1cc3   : > { %v3745_v13 = vpop.f32.mrf.mxu0  ;;  %3770 = vmatprep.mubr.msk.f32.mxu1 %vm4047_vm2, %v4046_v18  ;;  %3763 = vmatpush3.msra.mxu1 %v2869_v14  ;;  %v2965_v14 = vrot.slane %v4459_v43, %v4322_v2 }
0x1cc4   : > { %3764 = vmatprep.subr.mxu1 %v4046_v18 }
0x1cc5   : > { %3765 = vmatpush3.msra.mxu1 %v2868_v15 }
0x1cc6   : > { %3766 = vmatprep.subr.mxu1 %v4046_v18 }
0x1cc7   : > { %3767 = vmatpush3.msra.mxu1 %v2867_v17 }
0x1cc8   : > { %3768 = vmatprep.subr.mxu1 %v4046_v18 }
0x1cc9   : > { %v2862_v62 = vpop.f32.mrf.mxu0  ;;  %3769 = vmatpush3.msra.mxu1 %v2866_v20  ;;  %v3057_v20 = vld [vmem:[#allocation2 + $0x280] sm:$0xff] }
0x1cca   : > { %v2863_v19 = vadd.f32 %v2862_v62, %v2795_v16  ;;  %3784 = vmatprep.subr.mxu1 %v4046_v18 }
0x1ccb   : > { %v3761_v21 = vpop.f32.mrf.mxu0 }
0x1ccc   : > { %3771 = vmatmul.mubr.msk.f32.vlgmr.msra.gmra.mxu1 %vm265_vm4, %v2863_v19  ;;  %v3056_v21 = vld [vmem:[#allocation2 + $0x278] sm:$0xff] }
0x1ccd   : > { %3816 = vmatprep.mubr.msk.f32.mxu1 %vm4047_vm2, %v4046_v18  ;;  %3785 = vmatpush3.msra.mxu1 %v3070_v60 }
0x1cce   : > { %3786 = vmatprep.subr.mxu1 %v4046_v18 }
0x1ccf   : > { %3787 = vmatpush3.msra.mxu1 %v3069_v61 }
0x1cd0   : > { %3788 = vmatprep.subr.mxu1 %v4046_v18 }
0x1cd1   : > { %3789 = vmatpush3.msra.mxu1 %v3068_v63 }
0x1cd2   : > { %3790 = vmatprep.subr.mxu1 %v4046_v18 }
0x1cd3   : > { %3791 = vmatpush3.msra.mxu1 %v3067_v0 }
0x1cd4   : > { %3792 = vmatprep.subr.mxu1 %v4046_v18 }
0x1d82   : > { %v2762_v22 = vpop.f32.mrf.mxu1 }
0x1d83   : > { %v2766_v23 = vadd.f32 %v2762_v22, %v2526_v1  ;;  %v3066_v1 = vld [vmem:[#allocation2 + $0x2c8] sm:$0xff]  ;;  %v3055_v22 = vld [vmem:[#allocation2 + $0x270] sm:$0xff] }
0x1d84   : > { %v3750_v24 = vpop.f32.mrf.mxu1  ;;  %3793 = vmatpush3.msra.mxu1 %v3066_v1 }
0x1d85   : > { %v2767_v25 = vadd.f32 %v2766_v23, %v4350_v47  ;;  %v4461_v47 = vld [vmem:[#allocation2 + $0x240] sm:$0x7]  ;;  %3794 = vmatprep.subr.mxu1 %v4046_v18  ;;  %v3408_v23 = vld [vmem:[#allocation2 + $0x268] ss:$0 sm:$0xff] }
0x1d86   : > { %v2789_v11 = vrot.slane %v4461_v47, %v4287_v26  ;;  %3795 = vmatpush3.msra.mxu1 %v3065_v3  ;;  %v2970_v16 = vrot.slane %v4461_v47, %v4322_v2 }
0x1d87   : > { %v2768_v35 = vsel %vm265_vm4, %v2767_v25, 0.0  ;;  %3796 = vmatprep.subr.mxu1 %v4046_v18 }
0x1d88   : > { %2769 = vadd.xlane.f32.xlu0 %v2768_v35  ;;  %3797 = vmatpush3.msra.mxu1 %v3064_v4 }
0x1d89   : > { %3798 = vmatprep.subr.mxu1 %v4046_v18 }
0x1d8a   : > { %3799 = vmatpush3.msra.mxu1 %v3063_v5 }
0x1d8b   : > { %3800 = vmatprep.subr.mxu1 %v4046_v18 }
0x1d8c   : > { %v2940_v34 = vpop.f32.mrf.mxu1  ;;  %3801 = vmatpush3.msra.mxu1 %v3062_v6 }
0x1d8d   : > { %v2941_v44 = vadd.f32 %v2940_v34, %v2870_v42  ;;  %3802 = vmatprep.subr.mxu1 %v4046_v18  ;;  %v3171_v42 = vld [vmem:[#allocation2 + $0x20] sm:$0x1] }
0x1d8e   : > { %v3772_v36 = vpop.f32.mrf.mxu1  ;;  %3803 = vmatpush3.msra.mxu1 %v3061_v7 }
0x1d8f   : > { %v2947_v50 = vrot.slane %v2941_v44, %v4287_v26  ;;  %v2972_v26 = vld [vmem:[#allocation2 + $0x248] sm:$0xff]  ;;  %3804 = vmatprep.subr.mxu1 %v4046_v18 }
0x1d90   : > { %3780 = vmatpush3.msra.mxu0 %v2972_v26  ;;  %3805 = vmatpush3.msra.mxu1 %v3060_v49 }
0x1d91   : > { %3819 = vmatprep.subr.mxu0 %v4046_v18  ;;  %3806 = vmatprep.subr.mxu1 %v4046_v18 }
0x1d92   : > { %3807 = vmatpush3.msra.mxu1 %v3059_v8 }
0x1d93   : > { %3808 = vmatprep.subr.mxu1 %v4046_v18 }
0x1d94   : > { %3809 = vmatpush3.msra.mxu1 %v3058_v9 }
0x1d95   : > { %3810 = vmatprep.subr.mxu1 %v4046_v18 }
0x1d96   : > { %3811 = vmatpush3.msra.mxu1 %v3057_v20 }
0x1d97   : > { %3812 = vmatprep.subr.mxu1 %v4046_v18 }
0x1d98   : > { %3813 = vmatpush3.msra.mxu1 %v3056_v21 }
0x1d99   : > { %3814 = vmatprep.subr.mxu1 %v4046_v18 }
0x1d9a   : > { %3815 = vmatpush3.msra.mxu1 %v3055_v22 }
0x1e11   : > { %v2770_v29 = vpop.xlane.xlu0 %2769 }
0x1e12   : > { %v2771_v30 = vmul.f32 0.03125, %v2770_v29  ;;  %v3410_v29 = vld [vmem:[#allocation2 + $0x2f0] ss:$0 sm:$0xff] }
0x1e14   : > { %v2772_v31 = vsub.f32 %v2767_v25, %v2771_v30 }
0x1e16   : > { %v2773_v32 = vmul.f32 %v2772_v31, %v2772_v31 }
0x1e18   : > { %v2774_v33 = vsel %vm265_vm4, %v2773_v32, 0.0 }
0x1e19   : > { %2775 = vadd.xlane.f32.xlu1 %v2774_v33 }
0x1ea2   : > { %v2776_v37 = vpop.xlane.xlu1 %2775 }
0x1ea3   : > { %v2777_v39 = vmul.f32 0.03125, %v2776_v37 }
0x1ea5   : > { %v2778_v40 = vadd.f32 1e-05, %v2777_v39 }
0x1ea7   : > { %3937 = vrsqrt.f32 %v2778_v40 }
0x1eb4   : > { %v3938_v46 = vpop.eup %3937 }
0x1eb5   : > { %v2780_v48 = vmul.f32 %v3938_v46, %v2772_v31 }
0x1eb7   : > { %v2785_v27 = vmul.f32 %v2784_v45, %v2780_v48  ;;  %v3163_v48 = vrot.slane %v4459_v43, %v4344_v41 }
0x1eb9   : > { %v2790_v28 = vadd.f32 %v2789_v11, %v2785_v27 }
0x1ebb   : > { %v2948_v51 = vadd.f32 %v2947_v50, %v2790_v28  ;;  %v3168_v50 = vrot.slane %v4461_v47, %v4344_v41 }
0x1ebd   : > { %v2949_v52 = vsel %vm265_vm4, %v2948_v51, 0.0 }
0x1ebe   : > { %2950 = vadd.xlane.f32.xlu1 %v2949_v52  ;;  %v3170_v52 = vld [vmem:[#allocation2 + $0x18] sm:$0x1] }
0x1f47   : > { %v2951_v53 = vpop.xlane.xlu1 %2950 }
0x1f48   : > { %v2952_v54 = vmul.f32 0.03125, %v2951_v53 }
0x1f4a   : > { %v2953_v55 = vsub.f32 %v2948_v51, %v2952_v54 }
0x1f4c   : > { %v2954_v56 = vmul.f32 %v2953_v55, %v2953_v55 }
0x1f4e   : > { %v2955_v57 = vsel %vm265_vm4, %v2954_v56, 0.0 }
0x1f4f   : > { %2956 = vadd.xlane.f32.xlu1 %v2955_v57 }
0x1fd8   : > { %v2957_v10 = vpop.xlane.xlu1 %2956 }
0x1fd9   : > { %v2958_v12 = vmul.f32 0.03125, %v2957_v10 }
0x1fdb   : > { %v2959_v13 = vadd.f32 1e-05, %v2958_v12 }
0x1fdd   : > { %3939 = vrsqrt.f32 %v2959_v13 }
0x1fea   : > { %v3940_v15 = vpop.eup %3939 }
0x1feb   : > { %v2961_v17 = vmul.f32 %v3940_v15, %v2953_v55 }
0x1fed   : > { %v2966_v62 = vmul.f32 %v2965_v14, %v2961_v17 }
0x1fef   : > { %v2971_v19 = vadd.f32 %v2970_v16, %v2966_v62 }
0x1ff1   : > { %3782 = vmatmul.mubr.msk.f32.vlgmr.msra.gmra.mxu0 %vm265_vm4, %v2971_v19 }
0x1ff2   : > { %3821 = vmatprep.mubr.msk.f32.mxu0 %vm4047_vm2, %v4046_v18 }
0x20b1   : > { %v3050_v2 = vpop.f32.mrf.mxu0 }
0x20b2   : > { %v3051_v24 = vadd.f32 %v3408_v23, %v3050_v2 }
0x20b3   : > { %v3783_v25 = vpop.f32.mrf.mxu0 }
0x20b4   : > { %v3054_v35 = vmax.f32 %v3051_v24, 0.0 }
0x20b6   : > { %3817 = vmatmul.mubr.f32.vlgmr.msra.gmra.mxu1 %v3054_v35 }
0x2176   : > { %v3142_v30 = vpop.f32.mrf.mxu1 }
0x2177   : > { %v3143_v31 = vadd.f32 %v3410_v29, %v3142_v30 }
0x2178   : > { %v3818_v32 = vpop.f32.mrf.mxu1 }
0x2179   : > { %v3146_v33 = vadd.f32 %v3143_v31, %v2971_v19 }
0x217b   : > { %v3147_v34 = vsel %vm265_vm4, %v3146_v33, 0.0 }
0x217c   : > { %3148 = vadd.xlane.f32.xlu1 %v3147_v34 }
0x2205   : > { %v3149_v36 = vpop.xlane.xlu1 %3148 }
0x2206   : > { %v3150_v37 = vmul.f32 0.03125, %v3149_v36 }
0x2208   : > { %v3151_v39 = vsub.f32 %v3146_v33, %v3150_v37 }
0x220a   : > { %v3152_v40 = vmul.f32 %v3151_v39, %v3151_v39 }
0x220c   : > { %v3153_v18 = vsel %vm265_vm4, %v3152_v40, 0.0 }
0x220d   : > { %3154 = vadd.xlane.f32.xlu1 %v3153_v18 }
0x221e   : > { %3174 = vperm.xlu1 %3894, %v3171_v42  }
0x2296   : > { %v3155_v44 = vpop.xlane.xlu1 %3154 }
0x2297   : > { %v3156_v45 = vmul.f32 0.03125, %v3155_v44 }
0x2299   : > { %v3157_v46 = vadd.f32 1e-05, %v3156_v45 }
0x229a   : > { %v3175_v53 = vpop.permute.xlu1 %3174 }
0x229b   : > { %3941 = vrsqrt.f32 %v3157_v46 }
0x22a8   : > { %v3942_v11 = vpop.eup %3941 }
0x22a9   : > { %v3159_v27 = vmul.f32 %v3942_v11, %v3151_v39 }
0x22ab   : > { %v3164_v28 = vmul.f32 %v3163_v48, %v3159_v27 }
0x22ad   : > { %v3169_v51 = vadd.f32 %v3168_v50, %v3164_v28 }
0x22af   : > { %3820 = vmatpush3.xpose.msk.msra.mxu0 %vm265_vm4, %v3169_v51 }
0x22b2   : > { %3822 = vmatmul.mubr.msk.f32.vlgmr.msra.gmra.mxu0 %vm265_vm4, %v3170_v52 }
0x2372   : > { %v3249_v54 = vpop.f32.mrf.mxu0 }
0x2373   : > { %v3250_v55 = vadd.f32 %v3249_v54, %v3175_v53 }
0x2374   : > { %v3823_v56 = vpop.f32.mrf.mxu0 }
0x2375   : > { %v3413_v57 = vmul.f32 -1.442695, %v3250_v55 }
0x2377   : > { %3943 = vpow2.f32 %v3413_v57 }
0x2384   : > { %v3944_v43 = vpop.eup %3943 }
0x2385   : > { %v3256_v58 = vadd.f32 1.0, %v3944_v43 }
0x2387   : > { %3945 = vrcp.f32 %v3256_v58 }
0x2394   : > { %v3946_v41 = vpop.eup %3945 }
0x2395   : > { %v3259_v47 = vmul.f32 %v3946_v41, %v3250_v55 }
0x2397   : > { %3947 = vtanh.f32 %v3259_v47 }
0x23a4   : > { %v3948_v38 = vpop.eup %3947 }
0x23a5   : > { %3262 = vst.msk [vmem:[%s186_s11] sm:$0x1] %vm3261_vm6, %v3948_v38 }
0x23a6   : > { %3988 = shalt.err (!%p3985_p0)
}
0x23a7   : > { %s3989_s29 = scalar_lea.hbm %s4509_s24, 16  ;;  %s3993_s6 = scalar_lea.hbm %s4547_s3, 32 }
0x23a8   : > { %p3990_p1 = scmp.ne.s32.totalorder %s4509_s24, %s3989_s29  ;;  %p3994_p4 = scmp.lt.s32.totalorder %s4509_s24, %s4547_s3 }
0x23a9   : > { %p3995_p7 = scmp.lt.s32.totalorder %s3993_s6, %s3989_s29 }
0x23aa   : > { %p3991_p2 = pnand %p3990_p1, %p4120_p5 }
0x23ab   : > { %p3996_p8 = por %p3995_p7, %p3994_p4 }
0x23ac   : > { %p3992_p3 = pneg %p3991_p2 }
0x23ae   : > { %p3997_p6 = pnand %p3996_p8, %p3992_p3 }
0x23b0   : > { %4000 = shalt.err (!%p3997_p6)
}
0x23b1   : > { %3828 = dma.vmem_to_hbm [thread:$0]  (%p4120_p5), %s3277_s17, 16, %s4509_s24, %s3264_s25  }
0x23b2 PF: > { %p3840_p9 = scmp.ge.s32.totalorder %s4039_s15, 2  ;;  %s3288_s9 = sand.u32 1, %s4027_s12  }
0x23b3   : > { %p4551_p10 = scmp.ne.s32.totalorder %s4549_s23, 0  ;;  %s3289_s5 = scalar_lea.sflag [#allocation4], %s3288_s9 }
0x23b5   : > { %p3835_p11 = pnand %p3840_p9, %p4551_p10 }
0x23b7   : > { %p3836_p12 = pneg %p3835_p11 }
0x23b9   : > { %4022 = dma.done.wait (%p3836_p12), %s3289_s5, 16  }
0x23ba   : > { %4024 = vsyncadd (%p3836_p12), %s3289_s5, 4294967280  ;;  %p14_p13 = scmp.ge.s32.totalorder %s4107_s18, 4   ;;  %s4552_s12 = smov %s4031_s13 }
0x23bb   : > { %s4553_s13 = smov %s4035_s14  ;;  %s4554_s14 = smov %s4118_s21 }
0x23bc   : > { %s4555_s15 = smov %s4107_s18  ;;  %16 = sbr.rel (!%p14_p13) target bundleno = 4 (0x4), region = 75 }
0x23c1   :  { %3293 = vsyncpa [#allocation3], 1 }
0x23c2   :  { %3295 = vsyncpa [#allocation3 + $0x1], 1 }
0x23c3   :  { %3296 = vsyncpa [#allocation4], 1 }
0x23c4   :  { %3298 = vsyncpa [#allocation4 + $0x1], 1 }

</bundles_post_ra>
